<compile_context>
chip_gen: v7x
topology: tpu7x:2x2x1
jax: 0.10.0
libtpu: 0.0.40
codegen_flags: <defaults>
</compile_context>

<pallas_src>
import functools

import jax
import jax.numpy as jnp
from jax import lax
from jax.experimental import pallas as pl
from jax.experimental.pallas import tpu as pltpu

LN_EPS = 1e-5    # PyTorch nn.LayerNorm default eps
CLS_EPS = 1e-6   # eps used for the obj cls denominator in the reference module


def _view_generator_kernel(
        xo_ref, xv_ref, xt_ref, add_ref,
        wo_ref, bo_ref, g1o_ref, be1o_ref, g2o_ref, be2o_ref,
        wv_ref, bv_ref, g1v_ref, be1v_ref, g2v_ref, be2v_ref,
        wt_ref, bt_ref, g1t_ref, be1t_ref, g2t_ref, be2t_ref,
        out_o_ref, out_v_ref, out_t_ref, *, max_len, matmul_dtype):
    """One grid step == one batch tile; all three branches, fully fused."""

    def mlp(x, w_ref, b_ref, g1_ref, be1_ref, g2_ref, be2_ref):
        # x: (TN, L, d_in) f32 -> LN(d_in) -> Linear -> [Dropout=id] -> LN(d_out)
        tn, seq, d_in = x.shape
        d_out = w_ref.shape[1]
        x2 = x.reshape(tn * seq, d_in)                 # one big 2-D matmul M dim
        mu = jnp.mean(x2, axis=-1, keepdims=True)
        diff = x2 - mu
        var = jnp.mean(diff * diff, axis=-1, keepdims=True)
        xn = diff * lax.rsqrt(var + LN_EPS) * g1_ref[...] + be1_ref[...]
        w = w_ref[...]
        if matmul_dtype is not None:                   # bf16 operands on v6e/v7x
            xn = xn.astype(matmul_dtype)
            w = w.astype(matmul_dtype)
        y = jnp.dot(xn, w, preferred_element_type=jnp.float32) + b_ref[...]
        # TODO(synk): nn.Dropout is identity here (inference); train-mode RNG
        # not implemented.
        mu2 = jnp.mean(y, axis=-1, keepdims=True)
        d2 = y - mu2
        var2 = jnp.mean(d2 * d2, axis=-1, keepdims=True)
        yn = d2 * lax.rsqrt(var2 + LN_EPS) * g2_ref[...] + be2_ref[...]
        return yn.reshape(tn, seq, d_out)

    def finalize(cls, yn, out_ref):
        # [cls, emb rows, zero pad] assembled in registers, ONE aligned store.
        tn, seq, d_out = yn.shape
        parts = [cls, yn]
        pad = max_len - 1 - seq
        if pad > 0:
            parts.append(jnp.zeros((tn, pad, d_out), jnp.float32))
        out_ref[...] = jnp.concatenate(parts, axis=1).astype(out_ref.dtype)

    # ---- obj branch: zero all-zero rows; cls = masked sum / (#kept + 1e-6) ----
    xo = xo_ref[...].astype(jnp.float32)
    yn_o = mlp(xo, wo_ref, bo_ref, g1o_ref, be1o_ref, g2o_ref, be2o_ref)
    keep = (jnp.sum(jnp.abs(xo), axis=-1, keepdims=True) != 0.0
            ).astype(jnp.float32)                                  # (TN, L_obj, 1)
    yn_o = yn_o * keep
    count = jnp.sum(keep, axis=1, keepdims=True)                   # (TN, 1, 1)
    cls_o = jnp.sum(yn_o, axis=1, keepdims=True) / (count + CLS_EPS)
    finalize(cls_o, yn_o, out_o_ref)

    # ---- vis branch: cls = mean over L ----
    yn_v = mlp(xv_ref[...].astype(jnp.float32),
               wv_ref, bv_ref, g1v_ref, be1v_ref, g2v_ref, be2v_ref)
    finalize(jnp.mean(yn_v, axis=1, keepdims=True), yn_v, out_v_ref)

    # ---- txt branch: + pos/rank embeddings; cls = mean over L ----
    yn_t = mlp(xt_ref[...].astype(jnp.float32),
               wt_ref, bt_ref, g1t_ref, be1t_ref, g2t_ref, be2t_ref)
    yn_t = yn_t + add_ref[...].astype(jnp.float32)
    finalize(jnp.mean(yn_t, axis=1, keepdims=True), yn_t, out_t_ref)


def view_generator_forward(obj, vis, txt, pos_idx, rank_idx,
                           obj_params, vis_params, txt_params,
                           pos_tbl, rank_tbl, *,
                           batch_tile=8, matmul_dtype=None):
    """Returns the three padded views, each of shape (N, max_len, d_out).

    Parameter tuples are (W, b, g1, be1, g2, be2) with W already laid out as
    (d_in, d_out) — the transpose of the PyTorch Linear weight, done once when
    the parameters are converted, never per call.
    """
    n, l_obj, d_obj = obj.shape
    _, l_vis, d_vis = vis.shape
    _, l_txt, d_txt = txt.shape
    d_out = obj_params[0].shape[1]
    max_len = max(l_obj, l_vis, l_txt) + 1

    tn = max(1, min(batch_tile, n))
    n_pad = pl.cdiv(n, tn) * tn

    def pad_batch(a):
        if a.shape[0] == n_pad:
            return a
        return jnp.pad(a, ((0, n_pad - a.shape[0]),) + ((0, 0),) * (a.ndim - 1))

    # txt positional + rank embedding gathers (tiny tables) stay in JAX glue.
    add_txt = (jnp.take(pos_tbl, pos_idx, axis=0)
               + jnp.take(rank_tbl, rank_idx, axis=0))              # (N, L_txt, d_out)

    obj_b, vis_b, txt_b, add_b = (pad_batch(obj), pad_batch(vis),
                                  pad_batch(txt), pad_batch(add_txt))

    def tile_spec(seq, dim):
        return pl.BlockSpec((tn, seq, dim), lambda i: (i, 0, 0))

    def param_spec(shape):
        return pl.BlockSpec(shape, lambda i: tuple(0 for _ in shape))

    in_specs = [tile_spec(l_obj, d_obj), tile_spec(l_vis, d_vis),
                tile_spec(l_txt, d_txt), tile_spec(l_txt, d_out)]
    param_ops = []
    for p in (obj_params, vis_params, txt_params):
        for arr in p:
            param_ops.append(arr)
            in_specs.append(param_spec(arr.shape))

    out_spec = pl.BlockSpec((tn, max_len, d_out), lambda i: (i, 0, 0))
    out_shape = tuple(jax.ShapeDtypeStruct((n_pad, max_len, d_out), jnp.float32)
                      for _ in range(3))

    # Explicit VMEM budget from the (double-buffered) block sizes.  v7x only has
    # 64 MiB physical VMEM, so cap well below that; shrink batch_tile if bigger
    # shapes are needed.
    blk_elems = tn * (l_obj * d_obj + l_vis * d_vis + l_txt * d_txt
                      + l_txt * d_out + 3 * max_len * d_out)
    est_bytes = 4 * 4 * blk_elems + (8 << 20)          # 2x buffers + intermediates
    vmem_limit = int(min(max(est_bytes, 32 << 20), 48 << 20))

    kernel = functools.partial(_view_generator_kernel,
                               max_len=max_len, matmul_dtype=matmul_dtype)

    outs = pl.pallas_call(
        kernel,
        out_shape=out_shape,
        grid=(n_pad // tn,),
        in_specs=in_specs,
        out_specs=(out_spec, out_spec, out_spec),
        compiler_params=pltpu.CompilerParams(
            dimension_semantics=("parallel",),
            vmem_limit_bytes=vmem_limit),
    )(obj_b, vis_b, txt_b, add_b, *param_ops)

    return tuple(o[:n] for o in outs)


# ----------------------------- pure-JAX reference -----------------------------
def _branch_ref(x, W, b, g1, be1, g2, be2, add, apply_mask, max_len):
    mu = x.mean(-1, keepdims=True)
    var = ((x - mu) ** 2).mean(-1, keepdims=True)
    xn = (x - mu) / jnp.sqrt(var + LN_EPS) * g1 + be1
    y = xn @ W + b
    mu2 = y.mean(-1, keepdims=True)
    var2 = ((y - mu2) ** 2).mean(-1, keepdims=True)
    yn = (y - mu2) / jnp.sqrt(var2 + LN_EPS) * g2 + be2
    yn = yn + add
    if apply_mask:
        mask = (jnp.sum(jnp.abs(x), -1, keepdims=True) == 0).astype(jnp.float32)
        yn = yn * (1.0 - mask)
        denom = jnp.sum(1.0 - mask, axis=1, keepdims=True) + CLS_EPS
    else:
        denom = float(x.shape[1])
    cls = jnp.sum(yn, axis=1, keepdims=True) / denom
    v = jnp.concatenate([cls, yn], axis=1)
    pad = max_len - v.shape[1]
    if pad > 0:
        v = jnp.pad(v, ((0, 0), (0, pad), (0, 0)))
    return v


if __name__ == "__main__":
    key = jax.random.PRNGKey(0)
    N = 2
    d_obj, d_vis, d_txt, d_out = 32, 40, 48, 32
    topk = 8
    L_obj, L_vis, L_txt = 6, 9, 12
    max_len = max(L_obj, L_vis, L_txt) + 1

    ks = jax.random.split(key, 12)

    # --- deterministic parameter init (mirrors _initialize_weights) ---
    def lin_w(k, din, dout):  # kaiming_normal_ (relu): std = sqrt(2 / fan_in)
        return jax.random.normal(k, (din, dout), jnp.float32) * jnp.sqrt(2.0 / din)

    def ln_params(d):  # gamma = 1, beta = 0
        return jnp.ones((1, d), jnp.float32), jnp.zeros((1, d), jnp.float32)

    def branch_params(k, din, dout):
        W = lin_w(k, din, dout)                  # stored as (d_in, d_out)
        b = jnp.zeros((1, dout), jnp.float32)
        g1, be1 = ln_params(din)
        g2, be2 = ln_params(dout)
        return (W, b, g1, be1, g2, be2)

    obj_p = branch_params(ks[0], d_obj, d_out)
    vis_p = branch_params(ks[1], d_vis, d_out)
    txt_p = branch_params(ks[2], d_txt, d_out)

    # Embedding tables (re-initialized to normal(0, 0.01) by _initialize_weights).
    pos_tbl = 0.01 * jax.random.normal(ks[3], (1, d_out), jnp.float32)
    rank_tbl = 0.01 * jax.random.normal(ks[4], (topk * 8, d_out), jnp.float32)

    # --- inputs ---
    obj = jax.random.normal(ks[5], (N, L_obj, d_obj), jnp.float32)
    obj = obj.at[0, L_obj - 2:, :].set(0.0)      # some padded (all-zero) objects
    obj = obj.at[1, L_obj - 1:, :].set(0.0)
    vis = jax.random.normal(ks[6], (N, L_vis, d_vis), jnp.float32)
    txt = jax.random.normal(ks[7], (N, L_txt, d_txt), jnp.float32)
    pos_idx = jnp.zeros((N, L_txt), jnp.int32)   # pos table has a single row
    rank_idx = jax.random.randint(ks[8], (N, L_txt), 0, topk * 8)

    fwd = jax.jit(view_generator_forward)
    views = fwd(obj, vis, txt, pos_idx, rank_idx, obj_p, vis_p, txt_p,
                pos_tbl, rank_tbl)
    views = jax.block_until_ready(views)

    # --- correctness check against pure-JAX reference ---
    add_txt = (jnp.take(pos_tbl, pos_idx, axis=0)
               + jnp.take(rank_tbl, rank_idx, axis=0))
    refs = [
        _branch_ref(obj, *obj_p, jnp.zeros((N, L_obj, d_out), jnp.float32), True, max_len),
        _branch_ref(vis, *vis_p, jnp.zeros((N, L_vis, d_out), jnp.float32), False, max_len),
        _branch_ref(txt, *txt_p, add_txt, False, max_len),
    ]
    for v, r in zip(views, refs):
        assert v.shape == (N, max_len, d_out)
        err = float(jnp.max(jnp.abs(v - r)))
        assert err < 1e-2, err

    print("KERNEL_OK")
</pallas_src>

<mosaic_0001>
module attributes {stable_mosaic.version = 11 : i64} {
  func.func @_view_generator_kernel(%arg0: i32, %arg1: memref<2x6x32xf32, #tpu.memory_space<vmem>>, %arg2: memref<2x9x40xf32, #tpu.memory_space<vmem>>, %arg3: memref<2x12x48xf32, #tpu.memory_space<vmem>>, %arg4: memref<2x12x32xf32, #tpu.memory_space<vmem>>, %arg5: memref<32x32xf32, #tpu.memory_space<vmem>>, %arg6: memref<1x32xf32, #tpu.memory_space<vmem>>, %arg7: memref<1x32xf32, #tpu.memory_space<vmem>>, %arg8: memref<1x32xf32, #tpu.memory_space<vmem>>, %arg9: memref<1x32xf32, #tpu.memory_space<vmem>>, %arg10: memref<1x32xf32, #tpu.memory_space<vmem>>, %arg11: memref<40x32xf32, #tpu.memory_space<vmem>>, %arg12: memref<1x32xf32, #tpu.memory_space<vmem>>, %arg13: memref<1x40xf32, #tpu.memory_space<vmem>>, %arg14: memref<1x40xf32, #tpu.memory_space<vmem>>, %arg15: memref<1x32xf32, #tpu.memory_space<vmem>>, %arg16: memref<1x32xf32, #tpu.memory_space<vmem>>, %arg17: memref<48x32xf32, #tpu.memory_space<vmem>>, %arg18: memref<1x32xf32, #tpu.memory_space<vmem>>, %arg19: memref<1x48xf32, #tpu.memory_space<vmem>>, %arg20: memref<1x48xf32, #tpu.memory_space<vmem>>, %arg21: memref<1x32xf32, #tpu.memory_space<vmem>>, %arg22: memref<1x32xf32, #tpu.memory_space<vmem>>, %arg23: memref<2x13x32xf32, #tpu.memory_space<vmem>>, %arg24: memref<2x13x32xf32, #tpu.memory_space<vmem>>, %arg25: memref<2x13x32xf32, #tpu.memory_space<vmem>>) attributes {dimension_semantics = [#tpu.dimension_semantics<parallel>], iteration_bounds = array<i64: 1>, scalar_prefetch = 0 : i64, scratch_operands = 0 : i64, tpu.core_type = #tpu.core_type<tc>, window_params = [{transform_indices = @transform_0, window_bounds = array<i64: 2, 6, 32>}, {transform_indices = @transform_1, window_bounds = array<i64: 2, 9, 40>}, {transform_indices = @transform_2, window_bounds = array<i64: 2, 12, 48>}, {transform_indices = @transform_3, window_bounds = array<i64: 2, 12, 32>}, {pipeline_mode = #tpu.pipeline_mode<synchronous>, transform_indices = @transform_4, window_bounds = array<i64: 32, 32>}, {pipeline_mode = #tpu.pipeline_mode<synchronous>, transform_indices = @transform_5, window_bounds = array<i64: 1, 32>}, {pipeline_mode = #tpu.pipeline_mode<synchronous>, transform_indices = @transform_6, window_bounds = array<i64: 1, 32>}, {pipeline_mode = #tpu.pipeline_mode<synchronous>, transform_indices = @transform_7, window_bounds = array<i64: 1, 32>}, {pipeline_mode = #tpu.pipeline_mode<synchronous>, transform_indices = @transform_8, window_bounds = array<i64: 1, 32>}, {pipeline_mode = #tpu.pipeline_mode<synchronous>, transform_indices = @transform_9, window_bounds = array<i64: 1, 32>}, {pipeline_mode = #tpu.pipeline_mode<synchronous>, transform_indices = @transform_10, window_bounds = array<i64: 40, 32>}, {pipeline_mode = #tpu.pipeline_mode<synchronous>, transform_indices = @transform_11, window_bounds = array<i64: 1, 32>}, {pipeline_mode = #tpu.pipeline_mode<synchronous>, transform_indices = @transform_12, window_bounds = array<i64: 1, 40>}, {pipeline_mode = #tpu.pipeline_mode<synchronous>, transform_indices = @transform_13, window_bounds = array<i64: 1, 40>}, {pipeline_mode = #tpu.pipeline_mode<synchronous>, transform_indices = @transform_14, window_bounds = array<i64: 1, 32>}, {pipeline_mode = #tpu.pipeline_mode<synchronous>, transform_indices = @transform_15, window_bounds = array<i64: 1, 32>}, {pipeline_mode = #tpu.pipeline_mode<synchronous>, transform_indices = @transform_16, window_bounds = array<i64: 48, 32>}, {pipeline_mode = #tpu.pipeline_mode<synchronous>, transform_indices = @transform_17, window_bounds = array<i64: 1, 32>}, {pipeline_mode = #tpu.pipeline_mode<synchronous>, transform_indices = @transform_18, window_bounds = array<i64: 1, 48>}, {pipeline_mode = #tpu.pipeline_mode<synchronous>, transform_indices = @transform_19, window_bounds = array<i64: 1, 48>}, {pipeline_mode = #tpu.pipeline_mode<synchronous>, transform_indices = @transform_20, window_bounds = array<i64: 1, 32>}, {pipeline_mode = #tpu.pipeline_mode<synchronous>, transform_indices = @transform_21, window_bounds = array<i64: 1, 32>}, {transform_indices = @transform_22, window_bounds = array<i64: 2, 13, 32>}, {transform_indices = @transform_23, window_bounds = array<i64: 2, 13, 32>}, {transform_indices = @transform_24, window_bounds = array<i64: 2, 13, 32>}]} {
    %c0 = arith.constant 0 : index
    %c0_0 = arith.constant 0 : index
    %c0_1 = arith.constant 0 : index
    %0 = vector.load %arg1[%c0, %c0_0, %c0_1] : memref<2x6x32xf32, #tpu.memory_space<vmem>>, vector<2x6x32xf32>
    %1 = vector.shape_cast %0 : vector<2x6x32xf32> to vector<12x32xf32>
    %cst = arith.constant dense<0.000000e+00> : vector<12xf32>
    %2 = vector.multi_reduction <add>, %1, %cst [1] : vector<12x32xf32> to vector<12xf32>
    %3 = vector.shape_cast %2 : vector<12xf32> to vector<12x1xf32>
    %cst_2 = arith.constant 3.200000e+01 : f32
    %4 = vector.broadcast %cst_2 : f32 to vector<12x1xf32>
    %5 = arith.divf %3, %4 : vector<12x1xf32>
    %6 = vector.broadcast %5 : vector<12x1xf32> to vector<12x32xf32>
    %7 = arith.subf %1, %6 : vector<12x32xf32>
    %8 = arith.mulf %7, %7 : vector<12x32xf32>
    %cst_3 = arith.constant dense<0.000000e+00> : vector<12xf32>
    %9 = vector.multi_reduction <add>, %8, %cst_3 [1] : vector<12x32xf32> to vector<12xf32>
    %10 = vector.shape_cast %9 : vector<12xf32> to vector<12x1xf32>
    %cst_4 = arith.constant 3.200000e+01 : f32
    %11 = vector.broadcast %cst_4 : f32 to vector<12x1xf32>
    %12 = arith.divf %10, %11 : vector<12x1xf32>
    %cst_5 = arith.constant 9.99999974E-6 : f32
    %13 = vector.broadcast %cst_5 : f32 to vector<12x1xf32>
    %14 = arith.addf %12, %13 : vector<12x1xf32>
    %15 = math.rsqrt %14 : vector<12x1xf32>
    %16 = vector.broadcast %15 : vector<12x1xf32> to vector<12x32xf32>
    %17 = arith.mulf %7, %16 : vector<12x32xf32>
    %c0_6 = arith.constant 0 : index
    %c0_7 = arith.constant 0 : index
    %18 = vector.load %arg7[%c0_6, %c0_7] : memref<1x32xf32, #tpu.memory_space<vmem>>, vector<1x32xf32>
    %19 = vector.broadcast %18 : vector<1x32xf32> to vector<12x32xf32>
    %20 = arith.mulf %17, %19 : vector<12x32xf32>
    %c0_8 = arith.constant 0 : index
    %c0_9 = arith.constant 0 : index
    %21 = vector.load %arg8[%c0_8, %c0_9] : memref<1x32xf32, #tpu.memory_space<vmem>>, vector<1x32xf32>
    %22 = vector.broadcast %21 : vector<1x32xf32> to vector<12x32xf32>
    %23 = arith.addf %20, %22 : vector<12x32xf32>
    %c0_10 = arith.constant 0 : index
    %c0_11 = arith.constant 0 : index
    %24 = vector.load %arg5[%c0_10, %c0_11] : memref<32x32xf32, #tpu.memory_space<vmem>>, vector<32x32xf32>
    %cst_12 = arith.constant dense<0.000000e+00> : vector<12x32xf32>
    %25 = tpu.matmul %23, %24, %cst_12 {dimension_numbers = #tpu.dot_dimension_numbers<[1], [0], [0], [1], [0, 0, 1, 1], [], []>} : vector<12x32xf32>, vector<32x32xf32>, vector<12x32xf32> -> vector<12x32xf32>
    %c0_13 = arith.constant 0 : index
    %c0_14 = arith.constant 0 : index
    %26 = vector.load %arg6[%c0_13, %c0_14] : memref<1x32xf32, #tpu.memory_space<vmem>>, vector<1x32xf32>
    %27 = vector.broadcast %26 : vector<1x32xf32> to vector<12x32xf32>
    %28 = arith.addf %25, %27 : vector<12x32xf32>
    %cst_15 = arith.constant dense<0.000000e+00> : vector<12xf32>
    %29 = vector.multi_reduction <add>, %28, %cst_15 [1] : vector<12x32xf32> to vector<12xf32>
    %30 = vector.shape_cast %29 : vector<12xf32> to vector<12x1xf32>
    %cst_16 = arith.constant 3.200000e+01 : f32
    %31 = vector.broadcast %cst_16 : f32 to vector<12x1xf32>
    %32 = arith.divf %30, %31 : vector<12x1xf32>
    %33 = vector.broadcast %32 : vector<12x1xf32> to vector<12x32xf32>
    %34 = arith.subf %28, %33 : vector<12x32xf32>
    %35 = arith.mulf %34, %34 : vector<12x32xf32>
    %cst_17 = arith.constant dense<0.000000e+00> : vector<12xf32>
    %36 = vector.multi_reduction <add>, %35, %cst_17 [1] : vector<12x32xf32> to vector<12xf32>
    %37 = vector.shape_cast %36 : vector<12xf32> to vector<12x1xf32>
    %cst_18 = arith.constant 3.200000e+01 : f32
    %38 = vector.broadcast %cst_18 : f32 to vector<12x1xf32>
    %39 = arith.divf %37, %38 : vector<12x1xf32>
    %cst_19 = arith.constant 9.99999974E-6 : f32
    %40 = vector.broadcast %cst_19 : f32 to vector<12x1xf32>
    %41 = arith.addf %39, %40 : vector<12x1xf32>
    %42 = math.rsqrt %41 : vector<12x1xf32>
    %43 = vector.broadcast %42 : vector<12x1xf32> to vector<12x32xf32>
    %44 = arith.mulf %34, %43 : vector<12x32xf32>
    %c0_20 = arith.constant 0 : index
    %c0_21 = arith.constant 0 : index
    %45 = vector.load %arg9[%c0_20, %c0_21] : memref<1x32xf32, #tpu.memory_space<vmem>>, vector<1x32xf32>
    %46 = vector.broadcast %45 : vector<1x32xf32> to vector<12x32xf32>
    %47 = arith.mulf %44, %46 : vector<12x32xf32>
    %c0_22 = arith.constant 0 : index
    %c0_23 = arith.constant 0 : index
    %48 = vector.load %arg10[%c0_22, %c0_23] : memref<1x32xf32, #tpu.memory_space<vmem>>, vector<1x32xf32>
    %49 = vector.broadcast %48 : vector<1x32xf32> to vector<12x32xf32>
    %50 = arith.addf %47, %49 : vector<12x32xf32>
    %51 = vector.shape_cast %50 : vector<12x32xf32> to vector<2x6x32xf32>
    %52 = math.absf %0 : vector<2x6x32xf32>
    %cst_24 = arith.constant dense<0.000000e+00> : vector<2x6xf32>
    %53 = vector.multi_reduction <add>, %52, %cst_24 [2] : vector<2x6x32xf32> to vector<2x6xf32>
    %54 = vector.shape_cast %53 : vector<2x6xf32> to vector<2x6x1xf32>
    %cst_25 = arith.constant 0.000000e+00 : f32
    %55 = vector.broadcast %cst_25 : f32 to vector<2x6x1xf32>
    %56 = arith.cmpf one, %54, %55 : vector<2x6x1xf32>
    %57 = arith.extui %56 : vector<2x6x1xi1> to vector<2x6x1xi32>
    %58 = arith.sitofp %57 : vector<2x6x1xi32> to vector<2x6x1xf32>
    %59 = vector.broadcast %58 : vector<2x6x1xf32> to vector<2x6x32xf32>
    %60 = arith.mulf %51, %59 : vector<2x6x32xf32>
    %cst_26 = arith.constant dense<0.000000e+00> : vector<2x1xf32>
    %61 = vector.multi_reduction <add>, %58, %cst_26 [1] : vector<2x6x1xf32> to vector<2x1xf32>
    %62 = vector.shape_cast %61 : vector<2x1xf32> to vector<2x1x1xf32>
    %cst_27 = arith.constant dense<0.000000e+00> : vector<2x32xf32>
    %63 = vector.multi_reduction <add>, %60, %cst_27 [1] : vector<2x6x32xf32> to vector<2x32xf32>
    %64 = vector.shape_cast %63 : vector<2x32xf32> to vector<2x1x32xf32>
    %cst_28 = arith.constant 9.99999997E-7 : f32
    %65 = vector.broadcast %cst_28 : f32 to vector<2x1x1xf32>
    %66 = arith.addf %62, %65 : vector<2x1x1xf32>
    %67 = vector.broadcast %66 : vector<2x1x1xf32> to vector<2x1x32xf32>
    %68 = arith.divf %64, %67 : vector<2x1x32xf32>
    %cst_29 = arith.constant 0.000000e+00 : f32
    %69 = vector.broadcast %cst_29 : f32 to vector<2x6x32xf32>
    %70 = tpu.concatenate %68, %60, %69 in 1 : vector<2x1x32xf32>, vector<2x6x32xf32>, vector<2x6x32xf32> -> vector<2x13x32xf32>
    %c0_30 = arith.constant 0 : index
    %c0_31 = arith.constant 0 : index
    %c0_32 = arith.constant 0 : index
    %71 = vector.load %arg23[%c0_30, %c0_31, %c0_32] : memref<2x13x32xf32, #tpu.memory_space<vmem>>, vector<2x13x32xf32>
    tpu.vector_store %arg23[%c0_30, %c0_31, %c0_32], %70 {strides = array<i32>} : memref<2x13x32xf32, #tpu.memory_space<vmem>>, vector<2x13x32xf32>,
    %c0_33 = arith.constant 0 : index
    %c0_34 = arith.constant 0 : index
    %c0_35 = arith.constant 0 : index
    %72 = vector.load %arg2[%c0_33, %c0_34, %c0_35] : memref<2x9x40xf32, #tpu.memory_space<vmem>>, vector<2x9x40xf32>
    %73 = vector.shape_cast %72 : vector<2x9x40xf32> to vector<18x40xf32>
    %cst_36 = arith.constant dense<0.000000e+00> : vector<18xf32>
    %74 = vector.multi_reduction <add>, %73, %cst_36 [1] : vector<18x40xf32> to vector<18xf32>
    %75 = vector.shape_cast %74 : vector<18xf32> to vector<18x1xf32>
    %cst_37 = arith.constant 4.000000e+01 : f32
    %76 = vector.broadcast %cst_37 : f32 to vector<18x1xf32>
    %77 = arith.divf %75, %76 : vector<18x1xf32>
    %78 = vector.broadcast %77 : vector<18x1xf32> to vector<18x40xf32>
    %79 = arith.subf %73, %78 : vector<18x40xf32>
    %80 = arith.mulf %79, %79 : vector<18x40xf32>
    %cst_38 = arith.constant dense<0.000000e+00> : vector<18xf32>
    %81 = vector.multi_reduction <add>, %80, %cst_38 [1] : vector<18x40xf32> to vector<18xf32>
    %82 = vector.shape_cast %81 : vector<18xf32> to vector<18x1xf32>
    %cst_39 = arith.constant 4.000000e+01 : f32
    %83 = vector.broadcast %cst_39 : f32 to vector<18x1xf32>
    %84 = arith.divf %82, %83 : vector<18x1xf32>
    %cst_40 = arith.constant 9.99999974E-6 : f32
    %85 = vector.broadcast %cst_40 : f32 to vector<18x1xf32>
    %86 = arith.addf %84, %85 : vector<18x1xf32>
    %87 = math.rsqrt %86 : vector<18x1xf32>
    %88 = vector.broadcast %87 : vector<18x1xf32> to vector<18x40xf32>
    %89 = arith.mulf %79, %88 : vector<18x40xf32>
    %c0_41 = arith.constant 0 : index
    %c0_42 = arith.constant 0 : index
    %90 = vector.load %arg13[%c0_41, %c0_42] : memref<1x40xf32, #tpu.memory_space<vmem>>, vector<1x40xf32>
    %91 = vector.broadcast %90 : vector<1x40xf32> to vector<18x40xf32>
    %92 = arith.mulf %89, %91 : vector<18x40xf32>
    %c0_43 = arith.constant 0 : index
    %c0_44 = arith.constant 0 : index
    %93 = vector.load %arg14[%c0_43, %c0_44] : memref<1x40xf32, #tpu.memory_space<vmem>>, vector<1x40xf32>
    %94 = vector.broadcast %93 : vector<1x40xf32> to vector<18x40xf32>
    %95 = arith.addf %92, %94 : vector<18x40xf32>
    %c0_45 = arith.constant 0 : index
    %c0_46 = arith.constant 0 : index
    %96 = vector.load %arg11[%c0_45, %c0_46] : memref<40x32xf32, #tpu.memory_space<vmem>>, vector<40x32xf32>
    %cst_47 = arith.constant dense<0.000000e+00> : vector<18x32xf32>
    %97 = tpu.matmul %95, %96, %cst_47 {dimension_numbers = #tpu.dot_dimension_numbers<[1], [0], [0], [1], [0, 0, 1, 1], [], []>} : vector<18x40xf32>, vector<40x32xf32>, vector<18x32xf32> -> vector<18x32xf32>
    %c0_48 = arith.constant 0 : index
    %c0_49 = arith.constant 0 : index
    %98 = vector.load %arg12[%c0_48, %c0_49] : memref<1x32xf32, #tpu.memory_space<vmem>>, vector<1x32xf32>
    %99 = vector.broadcast %98 : vector<1x32xf32> to vector<18x32xf32>
    %100 = arith.addf %97, %99 : vector<18x32xf32>
    %cst_50 = arith.constant dense<0.000000e+00> : vector<18xf32>
    %101 = vector.multi_reduction <add>, %100, %cst_50 [1] : vector<18x32xf32> to vector<18xf32>
    %102 = vector.shape_cast %101 : vector<18xf32> to vector<18x1xf32>
    %cst_51 = arith.constant 3.200000e+01 : f32
    %103 = vector.broadcast %cst_51 : f32 to vector<18x1xf32>
    %104 = arith.divf %102, %103 : vector<18x1xf32>
    %105 = vector.broadcast %104 : vector<18x1xf32> to vector<18x32xf32>
    %106 = arith.subf %100, %105 : vector<18x32xf32>
    %107 = arith.mulf %106, %106 : vector<18x32xf32>
    %cst_52 = arith.constant dense<0.000000e+00> : vector<18xf32>
    %108 = vector.multi_reduction <add>, %107, %cst_52 [1] : vector<18x32xf32> to vector<18xf32>
    %109 = vector.shape_cast %108 : vector<18xf32> to vector<18x1xf32>
    %cst_53 = arith.constant 3.200000e+01 : f32
    %110 = vector.broadcast %cst_53 : f32 to vector<18x1xf32>
    %111 = arith.divf %109, %110 : vector<18x1xf32>
    %cst_54 = arith.constant 9.99999974E-6 : f32
    %112 = vector.broadcast %cst_54 : f32 to vector<18x1xf32>
    %113 = arith.addf %111, %112 : vector<18x1xf32>
    %114 = math.rsqrt %113 : vector<18x1xf32>
    %115 = vector.broadcast %114 : vector<18x1xf32> to vector<18x32xf32>
    %116 = arith.mulf %106, %115 : vector<18x32xf32>
    %c0_55 = arith.constant 0 : index
    %c0_56 = arith.constant 0 : index
    %117 = vector.load %arg15[%c0_55, %c0_56] : memref<1x32xf32, #tpu.memory_space<vmem>>, vector<1x32xf32>
    %118 = vector.broadcast %117 : vector<1x32xf32> to vector<18x32xf32>
    %119 = arith.mulf %116, %118 : vector<18x32xf32>
    %c0_57 = arith.constant 0 : index
    %c0_58 = arith.constant 0 : index
    %120 = vector.load %arg16[%c0_57, %c0_58] : memref<1x32xf32, #tpu.memory_space<vmem>>, vector<1x32xf32>
    %121 = vector.broadcast %120 : vector<1x32xf32> to vector<18x32xf32>
    %122 = arith.addf %119, %121 : vector<18x32xf32>
    %123 = vector.shape_cast %122 : vector<18x32xf32> to vector<2x9x32xf32>
    %cst_59 = arith.constant dense<0.000000e+00> : vector<2x32xf32>
    %124 = vector.multi_reduction <add>, %123, %cst_59 [1] : vector<2x9x32xf32> to vector<2x32xf32>
    %125 = vector.shape_cast %124 : vector<2x32xf32> to vector<2x1x32xf32>
    %cst_60 = arith.constant 9.000000e+00 : f32
    %126 = vector.broadcast %cst_60 : f32 to vector<2x1x32xf32>
    %127 = arith.divf %125, %126 : vector<2x1x32xf32>
    %cst_61 = arith.constant 0.000000e+00 : f32
    %128 = vector.broadcast %cst_61 : f32 to vector<2x3x32xf32>
    %129 = tpu.concatenate %127, %123, %128 in 1 : vector<2x1x32xf32>, vector<2x9x32xf32>, vector<2x3x32xf32> -> vector<2x13x32xf32>
    %c0_62 = arith.constant 0 : index
    %c0_63 = arith.constant 0 : index
    %c0_64 = arith.constant 0 : index
    %130 = vector.load %arg24[%c0_62, %c0_63, %c0_64] : memref<2x13x32xf32, #tpu.memory_space<vmem>>, vector<2x13x32xf32>
    tpu.vector_store %arg24[%c0_62, %c0_63, %c0_64], %129 {strides = array<i32>} : memref<2x13x32xf32, #tpu.memory_space<vmem>>, vector<2x13x32xf32>,
    %c0_65 = arith.constant 0 : index
    %c0_66 = arith.constant 0 : index
    %c0_67 = arith.constant 0 : index
    %131 = vector.load %arg3[%c0_65, %c0_66, %c0_67] : memref<2x12x48xf32, #tpu.memory_space<vmem>>, vector<2x12x48xf32>
    %132 = vector.shape_cast %131 : vector<2x12x48xf32> to vector<24x48xf32>
    %cst_68 = arith.constant dense<0.000000e+00> : vector<24xf32>
    %133 = vector.multi_reduction <add>, %132, %cst_68 [1] : vector<24x48xf32> to vector<24xf32>
    %134 = vector.shape_cast %133 : vector<24xf32> to vector<24x1xf32>
    %cst_69 = arith.constant 4.800000e+01 : f32
    %135 = vector.broadcast %cst_69 : f32 to vector<24x1xf32>
    %136 = arith.divf %134, %135 : vector<24x1xf32>
    %137 = vector.broadcast %136 : vector<24x1xf32> to vector<24x48xf32>
    %138 = arith.subf %132, %137 : vector<24x48xf32>
    %139 = arith.mulf %138, %138 : vector<24x48xf32>
    %cst_70 = arith.constant dense<0.000000e+00> : vector<24xf32>
    %140 = vector.multi_reduction <add>, %139, %cst_70 [1] : vector<24x48xf32> to vector<24xf32>
    %141 = vector.shape_cast %140 : vector<24xf32> to vector<24x1xf32>
    %cst_71 = arith.constant 4.800000e+01 : f32
    %142 = vector.broadcast %cst_71 : f32 to vector<24x1xf32>
    %143 = arith.divf %141, %142 : vector<24x1xf32>
    %cst_72 = arith.constant 9.99999974E-6 : f32
    %144 = vector.broadcast %cst_72 : f32 to vector<24x1xf32>
    %145 = arith.addf %143, %144 : vector<24x1xf32>
    %146 = math.rsqrt %145 : vector<24x1xf32>
    %147 = vector.broadcast %146 : vector<24x1xf32> to vector<24x48xf32>
    %148 = arith.mulf %138, %147 : vector<24x48xf32>
    %c0_73 = arith.constant 0 : index
    %c0_74 = arith.constant 0 : index
    %149 = vector.load %arg19[%c0_73, %c0_74] : memref<1x48xf32, #tpu.memory_space<vmem>>, vector<1x48xf32>
    %150 = vector.broadcast %149 : vector<1x48xf32> to vector<24x48xf32>
    %151 = arith.mulf %148, %150 : vector<24x48xf32>
    %c0_75 = arith.constant 0 : index
    %c0_76 = arith.constant 0 : index
    %152 = vector.load %arg20[%c0_75, %c0_76] : memref<1x48xf32, #tpu.memory_space<vmem>>, vector<1x48xf32>
    %153 = vector.broadcast %152 : vector<1x48xf32> to vector<24x48xf32>
    %154 = arith.addf %151, %153 : vector<24x48xf32>
    %c0_77 = arith.constant 0 : index
    %c0_78 = arith.constant 0 : index
    %155 = vector.load %arg17[%c0_77, %c0_78] : memref<48x32xf32, #tpu.memory_space<vmem>>, vector<48x32xf32>
    %cst_79 = arith.constant dense<0.000000e+00> : vector<24x32xf32>
    %156 = tpu.matmul %154, %155, %cst_79 {dimension_numbers = #tpu.dot_dimension_numbers<[1], [0], [0], [1], [0, 0, 1, 1], [], []>} : vector<24x48xf32>, vector<48x32xf32>, vector<24x32xf32> -> vector<24x32xf32>
    %c0_80 = arith.constant 0 : index
    %c0_81 = arith.constant 0 : index
    %157 = vector.load %arg18[%c0_80, %c0_81] : memref<1x32xf32, #tpu.memory_space<vmem>>, vector<1x32xf32>
    %158 = vector.broadcast %157 : vector<1x32xf32> to vector<24x32xf32>
    %159 = arith.addf %156, %158 : vector<24x32xf32>
    %cst_82 = arith.constant dense<0.000000e+00> : vector<24xf32>
    %160 = vector.multi_reduction <add>, %159, %cst_82 [1] : vector<24x32xf32> to vector<24xf32>
    %161 = vector.shape_cast %160 : vector<24xf32> to vector<24x1xf32>
    %cst_83 = arith.constant 3.200000e+01 : f32
    %162 = vector.broadcast %cst_83 : f32 to vector<24x1xf32>
    %163 = arith.divf %161, %162 : vector<24x1xf32>
    %164 = vector.broadcast %163 : vector<24x1xf32> to vector<24x32xf32>
    %165 = arith.subf %159, %164 : vector<24x32xf32>
    %166 = arith.mulf %165, %165 : vector<24x32xf32>
    %cst_84 = arith.constant dense<0.000000e+00> : vector<24xf32>
    %167 = vector.multi_reduction <add>, %166, %cst_84 [1] : vector<24x32xf32> to vector<24xf32>
    %168 = vector.shape_cast %167 : vector<24xf32> to vector<24x1xf32>
    %cst_85 = arith.constant 3.200000e+01 : f32
    %169 = vector.broadcast %cst_85 : f32 to vector<24x1xf32>
    %170 = arith.divf %168, %169 : vector<24x1xf32>
    %cst_86 = arith.constant 9.99999974E-6 : f32
    %171 = vector.broadcast %cst_86 : f32 to vector<24x1xf32>
    %172 = arith.addf %170, %171 : vector<24x1xf32>
    %173 = math.rsqrt %172 : vector<24x1xf32>
    %174 = vector.broadcast %173 : vector<24x1xf32> to vector<24x32xf32>
    %175 = arith.mulf %165, %174 : vector<24x32xf32>
    %c0_87 = arith.constant 0 : index
    %c0_88 = arith.constant 0 : index
    %176 = vector.load %arg21[%c0_87, %c0_88] : memref<1x32xf32, #tpu.memory_space<vmem>>, vector<1x32xf32>
    %177 = vector.broadcast %176 : vector<1x32xf32> to vector<24x32xf32>
    %178 = arith.mulf %175, %177 : vector<24x32xf32>
    %c0_89 = arith.constant 0 : index
    %c0_90 = arith.constant 0 : index
    %179 = vector.load %arg22[%c0_89, %c0_90] : memref<1x32xf32, #tpu.memory_space<vmem>>, vector<1x32xf32>
    %180 = vector.broadcast %179 : vector<1x32xf32> to vector<24x32xf32>
    %181 = arith.addf %178, %180 : vector<24x32xf32>
    %182 = vector.shape_cast %181 : vector<24x32xf32> to vector<2x12x32xf32>
    %c0_91 = arith.constant 0 : index
    %c0_92 = arith.constant 0 : index
    %c0_93 = arith.constant 0 : index
    %183 = vector.load %arg4[%c0_91, %c0_92, %c0_93] : memref<2x12x32xf32, #tpu.memory_space<vmem>>, vector<2x12x32xf32>
    %184 = arith.addf %182, %183 : vector<2x12x32xf32>
    %cst_94 = arith.constant dense<0.000000e+00> : vector<2x32xf32>
    %185 = vector.multi_reduction <add>, %184, %cst_94 [1] : vector<2x12x32xf32> to vector<2x32xf32>
    %186 = vector.shape_cast %185 : vector<2x32xf32> to vector<2x1x32xf32>
    %cst_95 = arith.constant 1.200000e+01 : f32
    %187 = vector.broadcast %cst_95 : f32 to vector<2x1x32xf32>
    %188 = arith.divf %186, %187 : vector<2x1x32xf32>
    %189 = tpu.concatenate %188, %184 in 1 : vector<2x1x32xf32>, vector<2x12x32xf32> -> vector<2x13x32xf32>
    %c0_96 = arith.constant 0 : index
    %c0_97 = arith.constant 0 : index
    %c0_98 = arith.constant 0 : index
    %190 = vector.load %arg25[%c0_96, %c0_97, %c0_98] : memref<2x13x32xf32, #tpu.memory_space<vmem>>, vector<2x13x32xf32>
    tpu.vector_store %arg25[%c0_96, %c0_97, %c0_98], %189 {strides = array<i32>} : memref<2x13x32xf32, #tpu.memory_space<vmem>>, vector<2x13x32xf32>,
    return
  }
  func.func @transform_0(%arg0: i32) -> (i32, i32, i32) {
    %c0_i32 = arith.constant 0 : i32
    %c0_i32_0 = arith.constant 0 : i32
    %c0_i32_1 = arith.constant 0 : i32
    return %arg0, %c0_i32, %c0_i32_0 : i32, i32, i32
  }
  func.func @transform_1(%arg0: i32) -> (i32, i32, i32) {
    %c0_i32 = arith.constant 0 : i32
    %c0_i32_0 = arith.constant 0 : i32
    %c0_i32_1 = arith.constant 0 : i32
    return %arg0, %c0_i32, %c0_i32_0 : i32, i32, i32
  }
  func.func @transform_2(%arg0: i32) -> (i32, i32, i32) {
    %c0_i32 = arith.constant 0 : i32
    %c0_i32_0 = arith.constant 0 : i32
    %c0_i32_1 = arith.constant 0 : i32
    return %arg0, %c0_i32, %c0_i32_0 : i32, i32, i32
  }
  func.func @transform_3(%arg0: i32) -> (i32, i32, i32) {
    %c0_i32 = arith.constant 0 : i32
    %c0_i32_0 = arith.constant 0 : i32
    %c0_i32_1 = arith.constant 0 : i32
    return %arg0, %c0_i32, %c0_i32_0 : i32, i32, i32
  }
  func.func @transform_4(%arg0: i32) -> (i32, i32) {
    %c0_i32 = arith.constant 0 : i32
    %c0_i32_0 = arith.constant 0 : i32
    %c0_i32_1 = arith.constant 0 : i32
    return %c0_i32, %c0_i32_0 : i32, i32
  }
  func.func @transform_5(%arg0: i32) -> (i32, i32) {
    %c0_i32 = arith.constant 0 : i32
    %c0_i32_0 = arith.constant 0 : i32
    %c0_i32_1 = arith.constant 0 : i32
    return %c0_i32, %c0_i32_0 : i32, i32
  }
  func.func @transform_6(%arg0: i32) -> (i32, i32) {
    %c0_i32 = arith.constant 0 : i32
    %c0_i32_0 = arith.constant 0 : i32
    %c0_i32_1 = arith.constant 0 : i32
    return %c0_i32, %c0_i32_0 : i32, i32
  }
  func.func @transform_7(%arg0: i32) -> (i32, i32) {
    %c0_i32 = arith.constant 0 : i32
    %c0_i32_0 = arith.constant 0 : i32
    %c0_i32_1 = arith.constant 0 : i32
    return %c0_i32, %c0_i32_0 : i32, i32
  }
  func.func @transform_8(%arg0: i32) -> (i32, i32) {
    %c0_i32 = arith.constant 0 : i32
    %c0_i32_0 = arith.constant 0 : i32
    %c0_i32_1 = arith.constant 0 : i32
    return %c0_i32, %c0_i32_0 : i32, i32
  }
  func.func @transform_9(%arg0: i32) -> (i32, i32) {
    %c0_i32 = arith.constant 0 : i32
    %c0_i32_0 = arith.constant 0 : i32
    %c0_i32_1 = arith.constant 0 : i32
    return %c0_i32, %c0_i32_0 : i32, i32
  }
  func.func @transform_10(%arg0: i32) -> (i32, i32) {
    %c0_i32 = arith.constant 0 : i32
    %c0_i32_0 = arith.constant 0 : i32
    %c0_i32_1 = arith.constant 0 : i32
    return %c0_i32, %c0_i32_0 : i32, i32
  }
  func.func @transform_11(%arg0: i32) -> (i32, i32) {
    %c0_i32 = arith.constant 0 : i32
    %c0_i32_0 = arith.constant 0 : i32
    %c0_i32_1 = arith.constant 0 : i32
    return %c0_i32, %c0_i32_0 : i32, i32
  }
  func.func @transform_12(%arg0: i32) -> (i32, i32) {
    %c0_i32 = arith.constant 0 : i32
    %c0_i32_0 = arith.constant 0 : i32
    %c0_i32_1 = arith.constant 0 : i32
    return %c0_i32, %c0_i32_0 : i32, i32
  }
  func.func @transform_13(%arg0: i32) -> (i32, i32) {
    %c0_i32 = arith.constant 0 : i32
    %c0_i32_0 = arith.constant 0 : i32
    %c0_i32_1 = arith.constant 0 : i32
    return %c0_i32, %c0_i32_0 : i32, i32
  }
  func.func @transform_14(%arg0: i32) -> (i32, i32) {
    %c0_i32 = arith.constant 0 : i32
    %c0_i32_0 = arith.constant 0 : i32
    %c0_i32_1 = arith.constant 0 : i32
    return %c0_i32, %c0_i32_0 : i32, i32
  }
  func.func @transform_15(%arg0: i32) -> (i32, i32) {
    %c0_i32 = arith.constant 0 : i32
    %c0_i32_0 = arith.constant 0 : i32
    %c0_i32_1 = arith.constant 0 : i32
    return %c0_i32, %c0_i32_0 : i32, i32
  }
  func.func @transform_16(%arg0: i32) -> (i32, i32) {
    %c0_i32 = arith.constant 0 : i32
    %c0_i32_0 = arith.constant 0 : i32
    %c0_i32_1 = arith.constant 0 : i32
    return %c0_i32, %c0_i32_0 : i32, i32
  }
  func.func @transform_17(%arg0: i32) -> (i32, i32) {
    %c0_i32 = arith.constant 0 : i32
    %c0_i32_0 = arith.constant 0 : i32
    %c0_i32_1 = arith.constant 0 : i32
    return %c0_i32, %c0_i32_0 : i32, i32
  }
  func.func @transform_18(%arg0: i32) -> (i32, i32) {
    %c0_i32 = arith.constant 0 : i32
    %c0_i32_0 = arith.constant 0 : i32
    %c0_i32_1 = arith.constant 0 : i32
    return %c0_i32, %c0_i32_0 : i32, i32
  }
  func.func @transform_19(%arg0: i32) -> (i32, i32) {
    %c0_i32 = arith.constant 0 : i32
    %c0_i32_0 = arith.constant 0 : i32
    %c0_i32_1 = arith.constant 0 : i32
    return %c0_i32, %c0_i32_0 : i32, i32
  }
  func.func @transform_20(%arg0: i32) -> (i32, i32) {
    %c0_i32 = arith.constant 0 : i32
    %c0_i32_0 = arith.constant 0 : i32
    %c0_i32_1 = arith.constant 0 : i32
    return %c0_i32, %c0_i32_0 : i32, i32
  }
  func.func @transform_21(%arg0: i32) -> (i32, i32) {
    %c0_i32 = arith.constant 0 : i32
    %c0_i32_0 = arith.constant 0 : i32
    %c0_i32_1 = arith.constant 0 : i32
    return %c0_i32, %c0_i32_0 : i32, i32
  }
  func.func @transform_22(%arg0: i32) -> (i32, i32, i32) {
    %c0_i32 = arith.constant 0 : i32
    %c0_i32_0 = arith.constant 0 : i32
    %c0_i32_1 = arith.constant 0 : i32
    return %arg0, %c0_i32, %c0_i32_0 : i32, i32, i32
  }
  func.func @transform_23(%arg0: i32) -> (i32, i32, i32) {
    %c0_i32 = arith.constant 0 : i32
    %c0_i32_0 = arith.constant 0 : i32
    %c0_i32_1 = arith.constant 0 : i32
    return %arg0, %c0_i32, %c0_i32_0 : i32, i32, i32
  }
  func.func @transform_24(%arg0: i32) -> (i32, i32, i32) {
    %c0_i32 = arith.constant 0 : i32
    %c0_i32_0 = arith.constant 0 : i32
    %c0_i32_1 = arith.constant 0 : i32
    return %arg0, %c0_i32, %c0_i32_0 : i32, i32, i32
  }
}

</mosaic_0001>

<bundles_post_ra>
// kernel: view_generator_forward.1
= control target key start
LH: loop header
LB: loop body
LE: loop exit
PB: predicated region body
PF: predicated region fallthrough
CT: control target
= control target key end

     0   :  { %v82_v0 = vlaneseq  ;;  %v2940_v2 = vmov 1966171168   ;;  %v2941_v5 = vmov 1983009808   ;;  %vm1010_vm0 = vcmask 326656   ;;  %s4258_s1 = inlined_call_operand.vmem [shape: f32[2,9,40], index: 1, kind: input, shape index: {}]   ;;  %s4259_s0 = inlined_call_operand.vmem [shape: f32[2,6,32], index: 0, kind: input, shape index: {}]   ;;  %s4260_s2 = inlined_call_operand.vmem [shape: f32[2,12,48], index: 2, kind: input, shape index: {}]   ;;  %s4261_s10 = inlined_call_operand.vmem [shape: f32[40,32], index: 10, kind: input, shape index: {}]   ;;  %s4262_s4 = inlined_call_operand.vmem [shape: f32[32,32], index: 4, kind: input, shape index: {}]   ;;  %s4263_s12 = inlined_call_operand.vmem [shape: f32[1,40], index: 12, kind: input, shape index: {}]   ;;  %s4264_s13 = inlined_call_operand.vmem [shape: f32[1,40], index: 13, kind: input, shape index: {}]   ;;  %s4265_s6 = inlined_call_operand.vmem [shape: f32[1,32], index: 6, kind: input, shape index: {}]   ;;  %s4266_s7 = inlined_call_operand.vmem [shape: f32[1,32], index: 7, kind: input, shape index: {}]   ;;  %s4267_s18 = inlined_call_operand.vmem [shape: f32[1,48], index: 18, kind: input, shape index: {}]   ;;  %s4268_s19 = inlined_call_operand.vmem [shape: f32[1,48], index: 19, kind: input, shape index: {}]   ;;  %s4269_s16 = inlined_call_operand.vmem [shape: f32[48,32], index: 16, kind: input, shape index: {}]   ;;  %s4270_s11 = inlined_call_operand.vmem [shape: f32[1,32], index: 11, kind: input, shape index: {}]   ;;  %s4271_s5 = inlined_call_operand.vmem [shape: f32[1,32], index: 5, kind: input, shape index: {}]   ;;  %s4272_s17 = inlined_call_operand.vmem [shape: f32[1,32], index: 17, kind: input, shape index: {}]   ;;  %s4273_s22 = inlined_call_operand.vmem [shape: f32[2,13,32], index: 22, kind: output, shape index: {0}]   ;;  %s4274_s14 = inlined_call_operand.vmem [shape: f32[1,32], index: 14, kind: input, shape index: {}]   ;;  %s4275_s15 = inlined_call_operand.vmem [shape: f32[1,32], index: 15, kind: input, shape index: {}]   ;;  %s4276_s8 = inlined_call_operand.vmem [shape: f32[1,32], index: 8, kind: input, shape index: {}]   ;;  %s4277_s3 = inlined_call_operand.vmem [shape: f32[2,12,32], index: 3, kind: input, shape index: {}]   ;;  %s4278_s9 = inlined_call_operand.vmem [shape: f32[1,32], index: 9, kind: input, shape index: {}]   ;;  %s4279_s20 = inlined_call_operand.vmem [shape: f32[1,32], index: 20, kind: input, shape index: {}]   ;;  %s4280_s21 = inlined_call_operand.vmem [shape: f32[1,32], index: 21, kind: input, shape index: {}]   ;;  %s4281_s23 = inlined_call_operand.vmem [shape: f32[2,13,32], index: 23, kind: output, shape index: {1}]   ;;  %s4282_s24 = inlined_call_operand.vmem [shape: f32[2,13,32], index: 24, kind: output, shape index: {2}]  }
   0x1   :  { %4332 = sst [smem:[#allocation35_spill]] %s4258_s1  ;;  %v752_v3 = vunpack.c.l.s4 %v2940_v2  ;;  %v80_v6 = vunpack.c.l.s4 %v2941_v5  ;;  %vm143_vm1 = vcmask 261120   ;;  %vm147_vm2 = vcmask 257024  }
   0x2   :  { %4333 = sst [smem:[#allocation36_spill]] %s4259_s0  ;;  %s4341_s27 = sld [smem:[#allocation35_spill]]  ;;  %v3082_v7 = vshrl.u32 %v82_v0, 7  ;;  %vm1017_vm3 = vcmask 320512   ;;  %vm2302_vm4 = vcmask 392192   ;;  %vm2950_vm5 = vmmov 0  }
   0x3   :  { %4334 = sst [smem:[#allocation37_spill]] %s4260_s2  ;;  %s4342_s1 = sld [smem:[#allocation36_spill]]  ;;  %v753_v10 = vunpack.c.0.s8 %v752_v3  ;;  %v81_v11 = vunpack.c.0.s8 %v80_v6  ;;  %vm1814_vm6 = vcmask 254976   ;;  %vm583_vm7 = vcmask 259072  }
   0x4   :  { %4335 = sst [smem:[#allocation38_spill]] %s4261_s10  ;;  %s4344_s26 = sld [smem:[#allocation37_spill]]  ;;  %vm738_vm8 = vcmask 258048   ;;  %vm2122_vm10 = vcmask 253952   ;;  %vm2277_vm11 = vcmask 1041408   ;;  %vm652_vm12 = vcmask 1045504  }
   0x5   :  { %4336 = sst [smem:[#allocation39_spill]] %s4262_s4  ;;  %v3091_v15 = vsub.s32 %v753_v10, %v3082_v7  ;;  %v3097_v17 = vsub.s32 %v81_v11, %v3082_v7  ;;  %s4384_s10 = sld [smem:[#allocation38_spill]]  ;;  %vm731_vm13 = vcmask 1040384   ;;  %vm734_vm15 = vcmask 1046528  }
   0x6   :  { %4337 = sst [smem:[#allocation40_spill]] %s4263_s12 }
   0x7   :  { %4338 = sst [smem:[#allocation41_spill]] %s4264_s13  ;;  %4343 = vst [vmem:[#allocation2_spill] sm:$0xff] %v3097_v17  ;;  %s4386_s28 = sld [smem:[#allocation40_spill]] }
   0x8   :  { %4339 = sst [smem:[#allocation42_spill]] %s4265_s6  ;;  %v742_v1 = vld [vmem:[%s4341_s27] sm:$0xff]  ;;  %v744_v4 = vld [vmem:[%s4341_s27 + $0x10] sm:$0xff]  ;;  %s4387_s29 = sld [smem:[#allocation41_spill]] }
   0x9   :  { %4340 = sst [smem:[#allocation43_spill]] %s4266_s7  ;;  %v74_v8 = vld [vmem:[%s4342_s1] sm:$0x3f]  ;;  %v750_v9 = vcombine.high %v742_v1, %v742_v1  ;;  %v813_v13 = vcombine.high %v744_v4, %v744_v4  ;;  %v75_v16 = vld [vmem:[%s4342_s1 + $0x8] sm:$0x3f]  ;;  %v757_v19 = vrot.slane %v742_v1, %v3091_v15  ;;  %v820_v22 = vrot.slane %v744_v4, %v3091_v15  ;;  %s4388_s30 = sld [smem:[#allocation42_spill]] }
   0xa   :  { %v2756_v12 = vld.sshfl [vmem:[%s4341_s27 + $0x8] sm:$0x1 pattern:$0x75316420]  ;;  %v78_v14 = vcombine.high %v74_v8, %v74_v8  ;;  %v94_v18 = vcombine.high %v75_v16, %v75_v16  ;;  %v3107_v24 = vrot.slane %v74_v8, %v3097_v17  ;;  %v3113_v26 = vrot.slane %v75_v16, %v3097_v17  ;;  %v3197_v4 = vld [vmem:[%s4344_s26] sm:$0xff]  ;;  %s4389_s4 = sld [smem:[#allocation43_spill]] }
   0xb   :  { %v764_v20 = vrot.slane %v750_v9, %v3091_v15  ;;  %v3102_v21 = vrot.slane %v2756_v12, %v3091_v15  ;;  %v827_v23 = vrot.slane %v813_v13, %v3091_v15  ;;  %v765_v27 = vcombine.high %v757_v19, %v757_v19  ;;  %v2757_v55 = vld.sshfl [vmem:[%s4341_s27 + $0x18] sm:$0x1 pattern:$0x75316420] }
   0xc   :  { %v3110_v25 = vrot.slane %v78_v14, %v3097_v17  ;;  %v3116_v29 = vrot.slane %v757_v19, %v3091_v15  ;;  %v828_v31 = vcombine.high %v820_v22, %v820_v22  ;;  %v3122_v33 = vrot.slane %v820_v22, %v3091_v15 }
   0xd   :  { %v766_v28 = vcombine.high %v764_v20, %v764_v20  ;;  %v3119_v30 = vrot.slane %v764_v20, %v3091_v15  ;;  %v829_v32 = vcombine.high %v827_v23, %v827_v23  ;;  %v3125_v34 = vrot.slane %v827_v23, %v3091_v15 }
   0xe   :  { %v3128_v35 = vrot.slane %v765_v27, %v3091_v15  ;;  %v3135_v37 = vcombine.high %v3107_v24, %v3107_v24  ;;  %v117_v38 = vcombine.low %v3110_v25, %v3113_v26  ;;  %v3140_v39 = vrot.slane %v828_v31, %v3091_v15 }
   0xf   :  { %v3131_v36 = vrot.slane %v766_v28, %v3091_v15  ;;  %v3143_v40 = vrot.slane %v829_v32, %v3091_v15  ;;  %v3147_v41 = vcombine.high %v3122_v33, %v3122_v33  ;;  %v3151_v42 = vcombine.high %v3125_v34, %v3125_v34  ;;  %v3226_v32 = vld [vmem:[%s4344_s26 + $0x10] sm:$0xff] }
  0x10   :  { %v894_v43 = vcombine.low %v3116_v29, %v3128_v35  ;;  %v2758_v44 = vcombine.high %v3116_v29, %v3128_v35  ;;  %v3163_v47 = vcombine.high %v3140_v39, %v3140_v39  ;;  %v943_v48 = vcombine.low %v3102_v21, %v3122_v33 }
  0x11   :  { %v896_v45 = vcombine.low %v3119_v30, %v3131_v36  ;;  %v2759_v46 = vcombine.high %v3119_v30, %v3131_v36  ;;  %v944_v49 = vcombine.low %v3140_v39, %v3147_v41  ;;  %v946_v50 = vcombine.low %v3143_v40, %v3151_v42 }
  0x12   :  { %v904_v51 = vrot.slane %v894_v43, %v3091_v15  ;;  %v911_v52 = vrot.slane %v2758_v44, %v3091_v15  ;;  %v945_v56 = vcombine.low %v3163_v47, %v3125_v34  ;;  %v953_v57 = vrot.slane %v943_v48, %v3091_v15  ;;  %v3232_v43 = vld [vmem:[%s4344_s26 + $0x8] sm:$0xf] }
  0x13   :  { %v918_v53 = vrot.slane %v896_v45, %v3091_v15  ;;  %v925_v54 = vrot.slane %v2759_v46, %v3091_v15  ;;  %v960_v58 = vrot.slane %v944_v49, %v3091_v15  ;;  %v974_v59 = vrot.slane %v946_v50, %v3091_v15  ;;  %v3245_v49 = vld [vmem:[%s4344_s26 + $0x18] sm:$0xf]  ;;  %s4385_s26 = sld [smem:[#allocation39_spill]] }
  0x14   :  { %v926_v60 = vcombine.low %v904_v51, %v911_v52  ;;  %v116_v62 = vcombine.low %v3107_v24, %v3135_v37  ;;  %v131_v63 = vrot.slane %v117_v38, %v3097_v17  ;;  %v967_v0 = vrot.slane %v945_v56, %v3091_v15  ;;  %4346 = vst [vmem:[#allocation4_spill] sm:$0xff] %v3245_v49 }
  0x15   :  { %v927_v61 = vcombine.low %v918_v53, %v925_v54  ;;  %v975_v1 = vcombine.low %v953_v57, %v960_v58  ;;  %v3189_v2 = vcombine.high %v3143_v40, %v3143_v40  ;;  %v3192_v3 = vrot.slane %v2757_v55, %v3091_v15 }
  0x16   :  { %v934_v5 = vrot.slane %v926_v60, %v3091_v15  ;;  %v124_v8 = vrot.slane %v116_v62, %v3097_v17  ;;  %v3203_v9 = vrot.slane %v94_v18, %v3097_v17  ;;  %v976_v10 = vcombine.low %v967_v0, %v974_v59 }
  0x17   :  { %v941_v6 = vrot.slane %v927_v61, %v3091_v15  ;;  %v983_v11 = vrot.slane %v975_v1, %v3091_v15  ;;  %v992_v12 = vcombine.low %v3189_v2, %v3192_v3  ;;  %v3210_v13 = vcombine.high %v3113_v26, %v3113_v26 }
  0x18   :  { %v132_v16 = vcombine.low %v124_v8, %v131_v63  ;;  %v3214_v19 = vcombine.high %v3197_v4, %v3197_v4  ;;  %v990_v20 = vrot.slane %v976_v10, %v3091_v15  ;;  %v3238_v45 = vcombine.high %v3226_v32, %v3226_v32 }
  0x19   :  { %v942_v14 = vcombine.low %v934_v5, %v941_v6  ;;  %v999_v18 = vrot.slane %v992_v12, %v3091_v15  ;;  %v133_v22 = vcombine.low %v3210_v13, %v3203_v9  ;;  %v2297_v51 = vcombine.low %v3232_v43, %v3226_v32 }
  0x1a   :  { %v144_v27 = vsel %vm143_vm1, %v132_v16, 0.0  ;;  %v991_v28 = vcombine.low %v983_v11, %v990_v20  ;;  %v2296_v44 = vcombine.low %v3197_v4, %v3214_v19  ;;  %4345 = vst [vmem:[#allocation3_spill] sm:$0xff] %v3238_v45  ;;  %v2298_v53 = vcombine.low %v3238_v45, %v3245_v49 }
  0x1b   :  { %v1011_v23 = vsel %vm1010_vm0, %v942_v14, 0.0  ;;  %145 = vadd.xlane.f32.xlu1 %v144_v27  ;;  %v140_v31 = vrot.slane %v133_v22, %v3097_v17  ;;  %v1006_v38 = vrot.slane %v999_v18, %v3091_v15  ;;  %v2306_v54 = vsel %vm2302_vm4, %v2297_v51, 0.0 }
  0x1c   :  { %1012 = vadd.xlane.f32.xlu0 %v1011_v23  ;;  %v1014_v46 = vsel %vm1010_vm0, %v991_v28, 0.0  ;;  %v2303_v52 = vsel %vm2302_vm4, %v2296_v44, 0.0  ;;  %v2309_v55 = vsel %vm2302_vm4, %v2298_v53, 0.0  ;;  %v2942_v56 = vmov 269488144  }
  0x1d   :  { %v148_v48 = vsel %vm147_vm2, %v140_v31, 0.0  ;;  %v1018_v50 = vsel %vm1017_vm3, %v1006_v38, 0.0  ;;  %v157_v57 = vunpack.c.l.s4 %v2942_v56  ;;  %v2943_v58 = vmov 842150450  }
  0x1e   :  { %v164_v59 = vunpack.c.l.s4 %v2943_v58  ;;  %v2944_v60 = vmov 1414812756   ;;  %v2945_v62 = vmov 1987475062   ;;  %v2946_v0 = vmov 839922192  }
  0x1f   :  { %149 = vadd.xlane.f32.xlu1 %v148_v48  ;;  %v171_v61 = vunpack.c.l.s4 %v2944_v60  ;;  %v178_v63 = vunpack.c.l.s4 %v2945_v62  ;;  %v2320_v1 = vunpack.c.l.s4 %v2946_v0  ;;  %v2947_v5 = vmov 1985246804  }
  0x20   :  { %1015 = vadd.xlane.f32.xlu0 %v1014_v46  ;;  %v2327_v6 = vunpack.c.l.s4 %v2947_v5  ;;  %v158_v8 = vunpack.c.0.s8 %v157_v57  ;;  %v165_v10 = vunpack.c.0.s8 %v164_v59  ;;  %v3256_v14 = vsub.s32 0, %v3082_v7 }
  0x21   :  { %v172_v11 = vunpack.c.0.s8 %v171_v61  ;;  %v179_v12 = vunpack.c.0.s8 %v178_v63  ;;  %v3259_v16 = vsub.s32 1, %v3082_v7  ;;  %v2321_v20 = vunpack.c.0.s8 %v2320_v1 }
  0x22   :  { %v2328_v18 = vunpack.c.0.s8 %v2327_v6  ;;  %v3262_v22 = vsub.s32 2, %v3082_v7  ;;  %v3265_v23 = vsub.s32 3, %v3082_v7  ;;  %v3268_v27 = vsub.s32 %v158_v8, %v3082_v7 }
  0x23   :  { %2304 = vadd.xlane.f32.xlu1 %v2303_v52  ;;  %v3271_v28 = vsub.s32 %v165_v10, %v3082_v7  ;;  %v3274_v31 = vsub.s32 %v172_v11, %v3082_v7  ;;  %v3277_v38 = vsub.s32 %v179_v12, %v3082_v7  ;;  %v795_v48 = vcombine.high %v3116_v29, %v3116_v29 }
  0x24   :  { %1019 = vadd.xlane.f32.xlu0 %v1018_v50  ;;  %4347 = vst [vmem:[#allocation5_spill] sm:$0xff] %v3262_v22  ;;  %4348 = vst [vmem:[#allocation6_spill] sm:$0xff] %v3265_v23  ;;  %v796_v50 = vcombine.high %v3119_v30, %v3119_v30  ;;  %v797_v51 = vcombine.high %v3128_v35, %v3128_v35  ;;  %v3286_v52 = vsub.s32 4, %v3082_v7  ;;  %v3293_v56 = vsub.s32 5, %v3082_v7 }
  0x25   :  { %4349 = vst [vmem:[#allocation7_spill] sm:$0xff] %v3274_v31  ;;  %v3296_v57 = vsub.s32 %v2321_v20, %v3082_v7  ;;  %v3299_v58 = vsub.s32 %v2328_v18, %v3082_v7  ;;  %v3302_v59 = vsub.s32 6, %v3082_v7  ;;  %v3305_v60 = vsub.s32 7, %v3082_v7 }
  0x26   :  { %4350 = vst [vmem:[#allocation8_spill] sm:$0xff] %v3286_v52  ;;  %4351 = vst [vmem:[#allocation9_spill] sm:$0xff] %v3293_v56 }
  0x27   :  { %2310 = vadd.xlane.f32.xlu1 %v2309_v55  ;;  %v798_v55 = vcombine.high %v3131_v36, %v3131_v36  ;;  %4352 = vst [vmem:[#allocation10_spill] sm:$0xff] %v3296_v57  ;;  %4353 = vst [vmem:[#allocation11_spill] sm:$0xff] %v3299_v58 }
  0x28   :  { %2307 = vadd.xlane.f32.xlu0 %v2306_v54  ;;  %4354 = vst [vmem:[#allocation12_spill] sm:$0xff] %v3302_v59 }
  0xa8   :  { %v146_v46 = vpop.xlane.xlu1 %145 }
  0xa9   :  { %v1013_v44 = vpop.xlane.xlu0 %1012  ;;  %v3288_v54 = vmul.f32 0.03125, %v146_v46 }
  0xaa   :  { %v1022_v53 = vmul.f32 0.025, %v1013_v44 }
  0xac   :  { %v150_v5 = vpop.xlane.xlu1 %149  ;;  %v1031_v6 = vrot.slane %v1022_v53, %v3256_v14  ;;  %v1035_v8 = vrot.slane %v1022_v53, %v3259_v16  ;;  %v1039_v7 = vrot.slane %v1022_v53, %v3262_v22  ;;  %v1043_v10 = vrot.slane %v1022_v53, %v3265_v23 }
  0xad   :  { %v1016_v1 = vpop.xlane.xlu0 %1015  ;;  %v153_v12 = vmul.f32 0.03125, %v150_v5  ;;  %v1047_v20 = vrot.slane %v1022_v53, %v3286_v52  ;;  %v1051_v18 = vrot.slane %v1022_v53, %v3293_v56  ;;  %v1055_v44 = vrot.slane %v1022_v53, %v3302_v59 }
  0xae   :  { %v3319_v11 = vmul.f32 0.025, %v1016_v1  ;;  %v1059_v46 = vrot.slane %v1022_v53, %v3305_v60  ;;  %v3326_v0 = vsub.f32 %v3116_v29, %v1031_v6  ;;  %v3329_v63 = vsub.f32 %v3128_v35, %v1035_v8 }
  0xaf   :  { %v190_v62 = vrot.slane %v153_v12, %v3268_v27  ;;  %v197_v1 = vrot.slane %v153_v12, %v3271_v28  ;;  %v3333_v61 = vsub.f32 %v795_v48, %v1039_v7  ;;  %v3335_v5 = vsub.f32 %v797_v51, %v1043_v10 }
  0xb0   :  { %v3338_v45 = vsub.f32 %v3119_v30, %v1047_v20  ;;  %v3341_v53 = vsub.f32 %v3131_v36, %v1051_v18  ;;  %v3343_v29 = vsub.f32 %v796_v50, %v1055_v44  ;;  %v3345_v6 = vsub.f32 %v798_v55, %v1059_v46  ;;  %v2305_v7 = vpop.xlane.xlu1 %2304 }
  0xb1   :  { %4355 = vst [vmem:[#allocation13_spill] sm:$0xff] %v3333_v61  ;;  %4356 = vst [vmem:[#allocation14_spill] sm:$0xff] %v3335_v5  ;;  %v1020_v49 = vpop.xlane.xlu0 %1019  ;;  %v3348_v8 = vsub.f32 %v3210_v13, %v190_v62  ;;  %v3351_v48 = vsub.f32 %v3203_v9, %v197_v1  ;;  %v1136_v51 = vmul.f32 %v3326_v0, %v3326_v0  ;;  %v2313_v44 = vmul.f32 0.020833334, %v2305_v7 }
  0xb2   :  { %4357 = vst [vmem:[#allocation15_spill] sm:$0xff] %v3338_v45  ;;  %4358 = vst [vmem:[#allocation16_spill] sm:$0xff] %v3341_v53  ;;  %v1024_v35 = vmul.f32 0.025, %v1020_v49  ;;  %v1137_v30 = vmul.f32 %v3329_v63, %v3329_v63  ;;  %v1138_v36 = vmul.f32 %v3333_v61, %v3333_v61  ;;  %v1139_v50 = vmul.f32 %v3335_v5, %v3335_v5 }
  0xb3   :  { %4359 = vst [vmem:[#allocation17_spill] sm:$0xff] %v3343_v29  ;;  %4360 = vst [vmem:[#allocation18_spill] sm:$0xff] %v3348_v8  ;;  %v1140_v13 = vmul.f32 %v3338_v45, %v3338_v45  ;;  %v1141_v55 = vmul.f32 %v3341_v53, %v3341_v53  ;;  %v1142_v62 = vmul.f32 %v3343_v29, %v3343_v29 }
  0xb4   :  { %4361 = vst [vmem:[#allocation19_spill] sm:$0xff] %v3351_v48  ;;  %v1095_v49 = vrot.slane %v1024_v35, %v3256_v14  ;;  %v1099_v9 = vrot.slane %v1024_v35, %v3259_v16  ;;  %v1143_v12 = vmul.f32 %v3345_v6, %v3345_v6  ;;  %v1172_v20 = vcombine.low %v1136_v51, %v1137_v30 }
  0xb5   :  { %v2308_v10 = vpop.xlane.xlu0 %2307  ;;  %v1173_v18 = vcombine.low %v1138_v36, %v1139_v50  ;;  %v1174_v45 = vcombine.low %v1140_v13, %v1141_v55  ;;  %v2325_v61 = vrot.slane %v2313_v44, %v3296_v57  ;;  %v2332_v13 = vrot.slane %v2313_v44, %v3299_v58 }
  0xb6   :  { %v3372_v46 = vsub.f32 %v3189_v2, %v1095_v49  ;;  %v3375_v1 = vsub.f32 %v3192_v3, %v1099_v9  ;;  %v2314_v35 = vmul.f32 0.020833334, %v2308_v10  ;;  %v1175_v5 = vcombine.low %v1142_v62, %v1143_v12 }
  0xb7   :  { %v1182_v53 = vrot.slane %v1172_v20, %v3091_v15  ;;  %v1189_v29 = vrot.slane %v1173_v18, %v3091_v15  ;;  %v1196_v30 = vrot.slane %v1174_v45, %v3091_v15  ;;  %v3400_v55 = vsub.f32 %v3197_v4, %v2325_v61 }
  0xb8   :  { %4362 = vst [vmem:[#allocation20_spill] sm:$0xff] %v3372_v46  ;;  %4363 = vst [vmem:[#allocation21_spill] sm:$0xff] %v3375_v1  ;;  %v3382_v51 = vmul.f32 %v3372_v46, %v3372_v46  ;;  %v3386_v2 = vmul.f32 %v3375_v1, %v3375_v1  ;;  %v2339_v3 = vrot.slane %v2314_v35, %v3296_v57  ;;  %v4391_v46 = vld [vmem:[#allocation13_spill] sm:$0xff] }
  0xb9   :  { %v2346_v7 = vrot.slane %v2314_v35, %v3299_v58  ;;  %v1203_v36 = vrot.slane %v1175_v5, %v3091_v15  ;;  %v1204_v50 = vcombine.low %v1182_v53, %v1189_v29  ;;  %4366 = vst [vmem:[#allocation24_spill] sm:$0xff] %v3400_v55  ;;  %v1063_v62 = vrot.slane %v3319_v11, %v3256_v14 }
  0xba   :  { %v3394_v49 = vsub.f32 %v3232_v43, %v2339_v3  ;;  %v3406_v5 = vsub.f32 %v3214_v19, %v2332_v13  ;;  %v1067_v53 = vrot.slane %v3319_v11, %v3259_v16  ;;  %v1071_v43 = vrot.slane %v3319_v11, %v3262_v22 }
  0xbb   :  { %v3397_v9 = vsub.f32 %v3226_v32, %v2346_v7  ;;  %v1205_v10 = vcombine.low %v1196_v30, %v1203_v36  ;;  %v1212_v45 = vrot.slane %v1204_v50, %v3091_v15  ;;  %v1075_v32 = vrot.slane %v3319_v11, %v3265_v23 }
  0xbc   :  { %4364 = vst [vmem:[#allocation22_spill] sm:$0xff] %v3394_v49  ;;  %4367 = vst [vmem:[#allocation25_spill] sm:$0xff] %v3406_v5  ;;  %v1079_v4 = vrot.slane %v3319_v11, %v3286_v52  ;;  %v1083_v61 = vrot.slane %v3319_v11, %v3293_v56  ;;  %v1087_v19 = vrot.slane %v3319_v11, %v3302_v59 }
  0xbd   :  { %4365 = vst [vmem:[#allocation23_spill] sm:$0xff] %v3397_v9  ;;  %v1219_v29 = vrot.slane %v1205_v10, %v3091_v15  ;;  %v1091_v12 = vrot.slane %v3319_v11, %v3305_v60  ;;  %v3424_v20 = vsub.f32 %v3102_v21, %v1063_v62  ;;  %v3427_v18 = vsub.f32 %v3122_v33, %v1067_v53 }
  0xbe   :  { %v3430_v44 = vsub.f32 %v3140_v39, %v1071_v43  ;;  %v3433_v35 = vsub.f32 %v3147_v41, %v1075_v32  ;;  %v3436_v3 = vsub.f32 %v3163_v47, %v1079_v4  ;;  %v3439_v30 = vsub.f32 %v3125_v34, %v1083_v61 }
  0xbf   :  { %4368 = vst [vmem:[#allocation26_spill] sm:$0xff] %v3424_v20  ;;  %4369 = vst [vmem:[#allocation27_spill] sm:$0xff] %v3427_v18  ;;  %v1220_v7 = vcombine.low %v1212_v45, %v1219_v29  ;;  %v3442_v11 = vsub.f32 %v3143_v40, %v1087_v19  ;;  %v3445_v21 = vsub.f32 %v3151_v42, %v1091_v12 }
  0xc0   :  { %4370 = vst [vmem:[#allocation28_spill] sm:$0xff] %v3430_v44  ;;  %4371 = vst [vmem:[#allocation29_spill] sm:$0xff] %v3433_v35  ;;  %v1144_v33 = vmul.f32 %v3424_v20, %v3424_v20  ;;  %v1145_v39 = vmul.f32 %v3427_v18, %v3427_v18  ;;  %v1146_v41 = vmul.f32 %v3430_v44, %v3430_v44 }
  0xc1   :  { %4372 = vst [vmem:[#allocation30_spill] sm:$0xff] %v3436_v3  ;;  %4373 = vst [vmem:[#allocation31_spill] sm:$0xff] %v3439_v30  ;;  %v1147_v47 = vmul.f32 %v3433_v35, %v3433_v35  ;;  %v1288_v34 = vsel %vm1010_vm0, %v1220_v7, 0.0  ;;  %v1148_v40 = vmul.f32 %v3436_v3, %v3436_v3  ;;  %v1149_v42 = vmul.f32 %v3439_v30, %v3439_v30 }
  0xc2   :  { %4374 = vst [vmem:[#allocation32_spill] sm:$0xff] %v3442_v11  ;;  %4375 = vst [vmem:[#allocation33_spill] sm:$0xff] %v3445_v21  ;;  %v1150_v36 = vmul.f32 %v3442_v11, %v3442_v11  ;;  %1289 = vadd.xlane.f32.xlu0 %v1288_v34  ;;  %v1151_v50 = vmul.f32 %v3445_v21, %v3445_v21  ;;  %v1221_v13 = vcombine.low %v1144_v33, %v1145_v39 }
  0xc3   :  { %v1222_v62 = vcombine.low %v1146_v41, %v1147_v47  ;;  %v4376_v10 = vrot.slane %v3288_v54, %v3268_v27  ;;  %v1223_v53 = vcombine.low %v1148_v40, %v1149_v42  ;;  %v4377_v43 = vrot.slane %v3288_v54, %v3271_v28 }
  0xc4   :  { %v4378_v4 = vrot.slane %v3288_v54, %v3274_v31  ;;  %v4379_v29 = vrot.slane %v3288_v54, %v3277_v38  ;;  %v1224_v12 = vcombine.low %v1150_v36, %v1151_v50  ;;  %v1231_v7 = vrot.slane %v1221_v13, %v3091_v15 }
  0xc5   :  { %v3468_v45 = vsub.f32 %v3107_v24, %v4376_v10  ;;  %v3474_v32 = vsub.f32 %v3135_v37, %v4377_v43  ;;  %v2311_v24 = vpop.xlane.xlu1 %2310  ;;  %v1238_v33 = vrot.slane %v1222_v62, %v3091_v15  ;;  %v1245_v39 = vrot.slane %v1223_v53, %v3091_v15 }
  0xc6   :  { %v3480_v61 = vsub.f32 %v3110_v25, %v4378_v4  ;;  %v3486_v19 = vsub.f32 %v3113_v26, %v4379_v29  ;;  %v1252_v41 = vrot.slane %v1224_v12, %v3091_v15  ;;  %v2315_v34 = vmul.f32 0.020833334, %v2311_v24  ;;  %v4380_v12 = vld [vmem:[#allocation3_spill] sm:$0xff] }
  0xc7   :  { %v210_v37 = vmul.f32 %v3468_v45, %v3468_v45  ;;  %v211_v25 = vmul.f32 %v3474_v32, %v3474_v32  ;;  %v1253_v47 = vcombine.low %v1231_v7, %v1238_v33  ;;  %v1270_v40 = vcombine.low %v3382_v51, %v3386_v2  ;;  %v4382_v33 = vld [vmem:[#allocation4_spill] sm:$0xff] }
  0xc8   :  { %v212_v54 = vmul.f32 %v3480_v61, %v3480_v61  ;;  %v213_v26 = vmul.f32 %v3486_v19, %v3486_v19  ;;  %v214_v50 = vmul.f32 %v3348_v8, %v3348_v8  ;;  %v215_v13 = vmul.f32 %v3351_v48, %v3351_v48  ;;  %v4394_v48 = vld [vmem:[#allocation16_spill] sm:$0xff] }
  0xc9   :  { %v222_v42 = vcombine.low %v210_v37, %v211_v25  ;;  %v1254_v62 = vcombine.low %v1245_v39, %v1252_v41  ;;  %v1261_v10 = vrot.slane %v1253_v47, %v3091_v15  ;;  %v2353_v53 = vrot.slane %v2315_v34, %v3296_v57 }
  0xca   :  { %v223_v36 = vcombine.low %v212_v54, %v213_v26  ;;  %v2360_v43 = vrot.slane %v2315_v34, %v3299_v58  ;;  %v1277_v51 = vrot.slane %v1270_v40, %v3091_v15  ;;  %v239_v2 = vcombine.low %v214_v50, %v215_v13 }
  0xcb   :  { %v230_v4 = vrot.slane %v222_v42, %v3097_v17  ;;  %v1268_v24 = vrot.slane %v1254_v62, %v3091_v15  ;;  %v3514_v7 = vsub.f32 %v4380_v12, %v2353_v53  ;;  %v2375_v54 = vmul.f32 %v3394_v49, %v3394_v49  ;;  %v1580_v12 = vld [vmem:[%s4384_s10 + $0x8] sm:$0xff] }
  0xcc   :  { %v237_v29 = vrot.slane %v223_v36, %v3097_v17  ;;  %v3517_v37 = vsub.f32 %v4382_v33, %v2360_v43  ;;  %v1284_v25 = vrot.slane %v1277_v51, %v3091_v15  ;;  %v2376_v26 = vmul.f32 %v3397_v9, %v3397_v9 }
  0xcd   :  { %4381 = vst [vmem:[#allocation3_spill] sm:$0xff] %v3514_v7  ;;  %v1269_v41 = vcombine.low %v1261_v10, %v1268_v24  ;;  %v246_v47 = vrot.slane %v239_v2, %v3097_v17  ;;  %v2373_v34 = vmul.f32 %v3400_v55, %v3400_v55  ;;  %v2374_v40 = vmul.f32 %v3406_v5, %v3406_v5  ;;  %v1579_v24 = vld [vmem:[%s4384_s10] sm:$0xff] }
  0xce   :  { %4383 = vst [vmem:[#allocation4_spill] sm:$0xff] %v3517_v37  ;;  %v238_v39 = vcombine.low %v230_v4, %v237_v29  ;;  %v1294_v50 = vsel %vm1017_vm3, %v1284_v25, 0.0  ;;  %v2386_v13 = vcombine.low %v2375_v54, %v2376_v26  ;;  %v2377_v53 = vmul.f32 %v3514_v7, %v3514_v7  ;;  %v383_v25 = vld [vmem:[%s4385_s26] sm:$0xff]  ;;  %v384_v54 = vld [vmem:[%s4385_s26 + $0x8] sm:$0xff] }
  0xcf   :  { %v1291_v36 = vsel %vm1010_vm0, %v1269_v41, 0.0  ;;  %v252_v62 = vsel %vm147_vm2, %v246_v47, 0.0  ;;  %v2385_v10 = vcombine.low %v2373_v34, %v2374_v40  ;;  %v2378_v43 = vmul.f32 %v3517_v37, %v3517_v37  ;;  %v1581_v41 = vld [vmem:[%s4384_s10 + $0x10] sm:$0xff]  ;;  %v1582_v47 = vld [vmem:[%s4384_s10 + $0x18] sm:$0xff] }
  0xd0   :  { %v249_v42 = vsel %vm143_vm1, %v238_v39, 0.0  ;;  %1292 = vadd.xlane.f32.xlu1 %v1291_v36  ;;  %v2394_v4 = vsel %vm2302_vm4, %v2386_v13, 0.0  ;;  %v2863_v33 = vpack.c.bf16 %v1580_v12, %v1579_v24  ;;  %v4295_v39 = vmov 0.0|0.0   ;;  %v385_v40 = vld [vmem:[%s4385_s26 + $0x10] sm:$0xff]  ;;  %v1583_v13 = vld [vmem:[%s4384_s10 + $0x20] sm:$0xff] }
  0xd1   :  { %250 = vadd.xlane.f32.xlu0 %v249_v42  ;;  %v2391_v29 = vsel %vm2302_vm4, %v2385_v10, 0.0  ;;  %v2387_v51 = vcombine.low %v2377_v53, %v2378_v43  ;;  %2862 = vmatprep.subr.bf16.mxu1 %v4295_v39  ;;  %v2854_v26 = vpack.c.bf16 %v384_v54, %v383_v25  ;;  %v2866_v34 = vpack.c.bf16 %v1582_v47, %v1581_v41  ;;  %v386_v42 = vld [vmem:[%s4385_s26 + $0x18] sm:$0xff]  ;;  %v2761_v10 = vld [vmem:[%s4387_s29] ss:$0 sm:$0xff] }
  0xd2   :  { %2864 = vmatpush3.bf16.msra.mxu1 %v2863_v33  ;;  %v2858_v36 = vpack.c.bf16 %v386_v42, %v385_v40  ;;  %v1504_v43 = vcombine.high %v2761_v10, %v2761_v10  ;;  %v1511_v24 = vrot.slane %v2761_v10, %v3091_v15  ;;  %v2747_v25 = vld [vmem:[%s4388_s30] ss:$0 sm:$0xff] }
  0xd3   :  { %v2397_v2 = vsel %vm2302_vm4, %v2387_v51, 0.0  ;;  %2865 = vmatprep.subr.bf16.mxu1 %v4295_v39  ;;  %2855 = vmatprep.subr.bf16.mxu0 %v2854_v26  ;;  %v2748_v54 = vld [vmem:[%s4389_s4] ss:$0 sm:$0xff] }
  0xd4   :  { %253 = vadd.xlane.f32.xlu1 %v252_v62  ;;  %2857 = vmatpush3.bf16.msra.mxu0 %v2854_v26  ;;  %v2760_v62 = vld [vmem:[%s4386_s28] ss:$0 sm:$0xff]  ;;  %v1518_v33 = vrot.slane %v1504_v43, %v3091_v15  ;;  %v1519_v47 = vcombine.high %v1511_v24, %v1511_v24  ;;  %v356_v42 = vcombine.high %v2748_v54, %v2748_v54 }
  0xd5   :  { %1295 = vadd.xlane.f32.xlu0 %v1294_v50  ;;  %2859 = vmatprep.subr.bf16.mxu0 %v2858_v36  ;;  %v4297_v50 = vmov 0.0   ;;  %v1423_v53 = vcombine.high %v2760_v62, %v2760_v62  ;;  %v1430_v51 = vrot.slane %v2760_v62, %v3091_v15  ;;  %v3606_v43 = vrot.slane %v2747_v25, %v3097_v17 }
  0xd6   :  { %2867 = vmatpush3.bf16.msra.mxu1 %v2866_v34  ;;  %2824 = vmatprep.mubr.msk.f32.mxu1 %vm2950_vm5, %v4297_v50  ;;  %v323_v34 = vcombine.high %v2747_v25, %v2747_v25  ;;  %v1520_v40 = vcombine.high %v1518_v33, %v1518_v33 }
  0xd7   :  { %2822 = vmatprep.subr.mxu1 %v4297_v50  ;;  %v1438_v26 = vcombine.high %v1430_v51, %v1430_v51 }
  0xd8   :  { %2392 = vadd.xlane.f32.xlu1 %v2391_v29  ;;  %2861 = vmatpush3.bf16.msra.mxu0 %v2858_v36  ;;  %v3591_v36 = vrot.slane %v1430_v51, %v3091_v15  ;;  %v3615_v51 = vrot.slane %v323_v34, %v3097_v17 }
  0xd9   :  { %2395 = vadd.xlane.f32.xlu0 %v2394_v4  ;;  %2868 = vmatprep.subr.bf16.mxu0 %v4295_v39  ;;  %v3597_v62 = vrot.slane %v1438_v26, %v3091_v15  ;;  %v3624_v26 = vrot.slane %v356_v42, %v3097_v17 }
  0xda   :  { %2823 = vmatpush3.msra.mxu1 %v1583_v13 }
  0xdb   :  { %2877 = vmatprep.subr.bf16.mxu1 %v4295_v39  ;;  %4390 = vst [vmem:[#allocation34_spill] sm:$0xff] %v3624_v26  ;;  %v3648_v39 = vcombine.high %v3606_v43, %v3606_v43 }
  0xdc   :  { %2398 = vadd.xlane.f32.xlu1 %v2397_v2  ;;  %v1437_v2 = vrot.slane %v1423_v53, %v3091_v15  ;;  %v3603_v53 = vrot.slane %v1511_v24, %v3091_v15 }
  0xde   :  { %v1439_v41 = vcombine.high %v1437_v2, %v1437_v2  ;;  %v3594_v13 = vrot.slane %v1437_v2, %v3091_v15  ;;  %v3618_v2 = vrot.slane %v2748_v54, %v3097_v17  ;;  %v3636_v54 = vcombine.high %v3597_v62, %v3597_v62 }
  0xe0   :  { %v3600_v10 = vrot.slane %v1439_v41, %v3091_v15  ;;  %v3632_v25 = vcombine.high %v3594_v13, %v3594_v13 }
  0xe2   :  { %v3640_v34 = vcombine.high %v3600_v10, %v3600_v10 }
 0x14f   :  { %v1290_v4 = vpop.xlane.xlu0 %1289 }
 0x150   :  { %v1297_v29 = vmul.f32 0.025, %v1290_v4  ;;  %v3609_v4 = vrot.slane %v1518_v33, %v3091_v15  ;;  %v3628_v33 = vcombine.high %v3591_v36, %v3591_v36 }
 0x152   :  { %v1300_v12 = vadd.f32 1e-05, %v1297_v29  ;;  %v3612_v29 = vrot.slane %v1519_v47, %v3091_v15 }
 0x154   :  { %2902 = vrsqrt.f32 %v1300_v12  ;;  %v3621_v12 = vrot.slane %v1520_v40, %v3091_v15  ;;  %v3644_v40 = vcombine.high %v3603_v53, %v3603_v53  ;;  %v3656_v50 = vcombine.high %v3612_v29, %v3612_v29 }
 0x156   :  { %v3666_v7 = vcombine.high %v3621_v12, %v3621_v12 }
 0x15d   :  { %v1293_v47 = vpop.xlane.xlu1 %1292 }
 0x15e   :  { %v251_v24 = vpop.xlane.xlu0 %250  ;;  %v1298_v42 = vmul.f32 0.025, %v1293_v47  ;;  %v2903_v37 = vpop.eup %2902  ;;  %v3662_v47 = vcombine.high %v3618_v2, %v3618_v2 }
 0x15f   :  { %v255_v41 = vmul.f32 0.03125, %v251_v24  ;;  %v3652_v24 = vcombine.high %v3609_v4, %v3609_v4  ;;  %v1312_v30 = vrot.slane %v2903_v37, %v3256_v14  ;;  %v1316_v3 = vrot.slane %v2903_v37, %v3259_v16 }
 0x160   :  { %v1324_v44 = vrot.slane %v2903_v37, %v3265_v23  ;;  %v1328_v18 = vrot.slane %v2903_v37, %v3286_v52  ;;  %v1301_v20 = vadd.f32 1e-05, %v1298_v42  ;;  %v1332_v55 = vrot.slane %v2903_v37, %v3293_v56  ;;  %v4392_v23 = vld [vmem:[#allocation14_spill] sm:$0xff]  ;;  %v4393_v52 = vld [vmem:[#allocation15_spill] sm:$0xff] }
 0x161   :  { %v257_v9 = vadd.f32 1e-05, %v255_v41  ;;  %v1320_v41 = vrot.slane %v2903_v37, %v3262_v22  ;;  %v254_v35 = vpop.xlane.xlu1 %253  ;;  %v1336_v58 = vrot.slane %v2903_v37, %v3302_v59  ;;  %v1340_v57 = vrot.slane %v2903_v37, %v3305_v60 }
 0x162   :  { %v1296_v21 = vpop.xlane.xlu0 %1295  ;;  %v256_v5 = vmul.f32 0.03125, %v254_v35  ;;  %v1399_v1 = vmul.f32 %v1312_v30, %v3326_v0  ;;  %v1400_v22 = vmul.f32 %v1316_v3, %v3329_v63  ;;  %v1402_v26 = vmul.f32 %v1324_v44, %v4392_v23 }
 0x163   :  { %2904 = vrsqrt.f32 %v257_v9  ;;  %v1299_v49 = vmul.f32 0.025, %v1296_v21  ;;  %v1401_v17 = vmul.f32 %v1320_v41, %v4391_v46  ;;  %v1403_v42 = vmul.f32 %v1328_v18, %v4393_v52 }
 0x164   :  { %v258_v9 = vadd.f32 1e-05, %v256_v5  ;;  %v1404_v59 = vmul.f32 %v1332_v55, %v4394_v48  ;;  %v1406_v0 = vmul.f32 %v1340_v57, %v3345_v6  ;;  %v1480_v63 = vmul.f32 %v3591_v36, %v1399_v1 }
 0x165   :  { %v1302_v11 = vadd.f32 1e-05, %v1299_v49  ;;  %v2393_v56 = vpop.xlane.xlu1 %2392  ;;  %v4395_v49 = vld [vmem:[#allocation17_spill] sm:$0xff]  ;;  %v1481_v46 = vmul.f32 %v3597_v62, %v1400_v22  ;;  %v1482_v23 = vmul.f32 %v3628_v33, %v1401_v17  ;;  %v1483_v52 = vmul.f32 %v3636_v54, %v1402_v26  ;;  %v3699_v17 = vld [vmem:[%s4267_s18] ss:$0 sm:$0xff] }
 0x166   :  { %v2396_v21 = vpop.xlane.xlu0 %2395  ;;  %v1405_v8 = vmul.f32 %v1336_v58, %v4395_v49  ;;  %v2400_v37 = vmul.f32 0.020833334, %v2393_v56  ;;  %v1484_v18 = vmul.f32 %v3594_v13, %v1403_v42  ;;  %v1485_v48 = vmul.f32 %v3600_v10, %v1404_v59 }
 0x167   :  { %2906 = vrsqrt.f32 %v1302_v11  ;;  %v2401_v35 = vmul.f32 0.020833334, %v2396_v21  ;;  %v1487_v57 = vmul.f32 %v3640_v34, %v1406_v0  ;;  %v1561_v6 = vadd.f32 %v3603_v53, %v1480_v63 }
 0x168   :  { %2908 = vrsqrt.f32 %v258_v9  ;;  %v2403_v5 = vadd.f32 1e-05, %v2400_v37  ;;  %v1486_v58 = vmul.f32 %v3632_v25, %v1405_v8  ;;  %v1562_v1 = vadd.f32 %v3612_v29, %v1481_v46 }
 0x169   :  { %2910 = vrsqrt.f32 %v1301_v20  ;;  %v2404_v55 = vadd.f32 1e-05, %v2401_v35  ;;  %v2399_v56 = vpop.xlane.xlu1 %2398  ;;  %v1563_v20 = vadd.f32 %v3644_v40, %v1482_v23  ;;  %v1564_v59 = vadd.f32 %v3656_v50, %v1483_v52 }
 0x16a   :  { %2912 = vrsqrt.f32 %v2403_v5  ;;  %v2402_v22 = vmul.f32 0.020833334, %v2399_v56  ;;  %v1565_v44 = vadd.f32 %v3609_v4, %v1484_v18  ;;  %v1566_v3 = vadd.f32 %v3621_v12, %v1485_v48 }
 0x16b   :  { %v1567_v30 = vadd.f32 %v3652_v24, %v1486_v58  ;;  %v1568_v11 = vadd.f32 %v3666_v7, %v1487_v57  ;;  %v3712_v42 = vcombine.high %v3699_v17, %v3699_v17  ;;  %v1609_v49 = vcombine.low %v1561_v6, %v1562_v1 }
 0x16c   :  { %v2405_v26 = vadd.f32 1e-05, %v2402_v22  ;;  %v1610_v37 = vcombine.low %v1563_v20, %v1564_v59  ;;  %2914 = vrsqrt.f32 %v2404_v55  ;;  %v1611_v5 = vcombine.low %v1565_v44, %v1566_v3  ;;  %v2496_v22 = vld [vmem:[%s4269_s16] sm:$0xff]  ;;  %v2497_v20 = vld [vmem:[%s4269_s16 + $0x8] sm:$0xff]  ;;  %v2498_v59 = vld [vmem:[%s4269_s16 + $0x10] sm:$0xff] }
 0x16d   :  { %v2905_v8 = vpop.eup %2904  ;;  %v1612_v18 = vcombine.low %v1567_v30, %v1568_v11  ;;  %v4396_v6 = vcombine.high %v3615_v51, %v3615_v51  ;;  %v2499_v30 = vld [vmem:[%s4269_s16 + $0x18] sm:$0xff]  ;;  %v2500_v11 = vld [vmem:[%s4269_s16 + $0x20] sm:$0xff] }
 0x16e   :  { %v269_v41 = vrot.slane %v2905_v8, %v3268_v27  ;;  %v276_v9 = vrot.slane %v2905_v8, %v3271_v28  ;;  %v283_v21 = vrot.slane %v2905_v8, %v3274_v31  ;;  %v290_v35 = vrot.slane %v2905_v8, %v3277_v38  ;;  %v3722_v38 = vld [vmem:[%s4268_s19] ss:$0 sm:$0xff] }
 0x16f   :  { %2916 = vrsqrt.f32 %v2405_v26  ;;  %v2501_v26 = vld [vmem:[%s4269_s16 + $0x28] sm:$0xff] }
 0x170   :  { %v311_v0 = vmul.f32 %v269_v41, %v3468_v45  ;;  %v312_v63 = vmul.f32 %v276_v9, %v3474_v32  ;;  %v313_v46 = vmul.f32 %v283_v21, %v3480_v61  ;;  %v314_v52 = vmul.f32 %v290_v35, %v3486_v19  ;;  %v4397_v41 = vld [vmem:[#allocation18_spill] sm:$0xff]  ;;  %v4398_v21 = vld [vmem:[#allocation19_spill] sm:$0xff] }
 0x171   :  { %v2907_v23 = vpop.eup %2906  ;;  %v1619_v32 = vrot.slane %v1609_v49, %v3091_v15  ;;  %v1626_v61 = vrot.slane %v1610_v37, %v3091_v15  ;;  %v4399_v49 = vld [vmem:[#allocation34_spill] sm:$0xff] }
 0x172   :  { %v2909_v48 = vpop.eup %2908  ;;  %v344_v58 = vmul.f32 %v3606_v43, %v311_v0  ;;  %v345_v45 = vmul.f32 %v3648_v39, %v312_v63  ;;  %v346_v57 = vmul.f32 %v3615_v51, %v313_v46  ;;  %v347_v1 = vmul.f32 %v4396_v6, %v314_v52 }
 0x173   :  { %v3728_v55 = vpop.eup %2910  ;;  %v297_v19 = vrot.slane %v2909_v48, %v3268_v27  ;;  %v304_v56 = vrot.slane %v2909_v48, %v3271_v28  ;;  %v1376_v8 = vrot.slane %v2907_v23, %v3256_v14  ;;  %v1380_v44 = vrot.slane %v2907_v23, %v3259_v16 }
 0x174   :  { %v377_v3 = vadd.f32 %v3618_v2, %v344_v58  ;;  %v378_v51 = vadd.f32 %v3662_v47, %v345_v45  ;;  %v379_v37 = vadd.f32 %v4399_v49, %v346_v57  ;;  %v4400_v0 = vcombine.high %v4399_v49, %v4399_v49  ;;  %v2913_v46 = vpop.eup %2912  ;;  %v4401_v57 = vld [vmem:[#allocation2_spill] sm:$0xff] }
 0x175   :  { %v315_v9 = vmul.f32 %v297_v19, %v4397_v41  ;;  %v316_v35 = vmul.f32 %v304_v56, %v4398_v21  ;;  %v3766_v23 = vcombine.high %v3722_v38, %v3722_v38  ;;  %v1633_v48 = vrot.slane %v1611_v5, %v3091_v15 }
 0x176   :  { %v380_v63 = vadd.f32 %v4400_v0, %v347_v1  ;;  %v400_v52 = vcombine.low %v377_v3, %v378_v51  ;;  %v2869_v58 = vpack.c.bf16 %v2497_v20, %v2496_v22  ;;  %v1640_v19 = vrot.slane %v1612_v18, %v3091_v15  ;;  %v4402_v0 = vld [vmem:[#allocation20_spill] sm:$0xff]  ;;  %v4403_v3 = vld [vmem:[#allocation21_spill] sm:$0xff]  ;;  %v3784_v20 = vpop.eup %2914 }
 0x177   :  { %v3770_v6 = vpack.c.bf16 %v2499_v30, %v2498_v59  ;;  %v3772_v56 = vpack.c.bf16 %v2501_v26, %v2500_v11  ;;  %v1641_v21 = vcombine.low %v1619_v32, %v1626_v61  ;;  %v348_v1 = vmul.f32 %v3606_v43, %v315_v9  ;;  %v4404_v59 = vld [vmem:[#allocation10_spill] sm:$0xff]  ;;  %v4405_v61 = vld [vmem:[#allocation11_spill] sm:$0xff] }
 0x178   :  { %v401_v45 = vcombine.low %v379_v37, %v380_v63  ;;  %v408_v41 = vrot.slane %v400_v52, %v4401_v57  ;;  %v349_v49 = vmul.f32 %v3648_v39, %v316_v35  ;;  %v3778_v31 = vmul.f32 %v1376_v8, %v4402_v0  ;;  %v4406_v37 = vld [vmem:[#allocation5_spill] sm:$0xff]  ;;  %v4411_v0 = vld [vmem:[#allocation24_spill] sm:$0xff] }
 0x179   :  { %v3781_v5 = vmul.f32 %v1380_v44, %v4403_v3  ;;  %v1642_v18 = vcombine.low %v1633_v48, %v1640_v19  ;;  %v2418_v51 = vrot.slane %v2913_v46, %v4404_v59  ;;  %v1649_v30 = vrot.slane %v1641_v21, %v3091_v15  ;;  %v3790_v39 = vpop.eup %2916  ;;  %v4409_v19 = vld [vmem:[#allocation9_spill] sm:$0xff]  ;;  %v4410_v21 = vld [vmem:[#allocation12_spill] sm:$0xff] }
 0x17a   :  { %v415_v22 = vrot.slane %v401_v45, %v4401_v57  ;;  %v381_v32 = vadd.f32 %v3618_v2, %v348_v1  ;;  %v382_v43 = vadd.f32 %v3662_v47, %v349_v49  ;;  %v2425_v8 = vrot.slane %v2913_v46, %v4405_v61  ;;  %v4407_v2 = vld [vmem:[#allocation6_spill] sm:$0xff] }
 0x17b   :  { %v1656_v44 = vrot.slane %v1642_v18, %v3091_v15  ;;  %v1344_v26 = vrot.slane %v3728_v55, %v3256_v14  ;;  %v1348_v35 = vrot.slane %v3728_v55, %v3259_v16  ;;  %v1352_v63 = vrot.slane %v3728_v55, %v4406_v37  ;;  %v4408_v14 = vld [vmem:[#allocation8_spill] sm:$0xff]  ;;  %v4416_v37 = vld [vmem:[#allocation29_spill] sm:$0xff] }
 0x17c   :  { %v416_v11 = vcombine.low %v408_v41, %v415_v22  ;;  %v417_v9 = vcombine.low %v381_v32, %v382_v43  ;;  %v1356_v47 = vrot.slane %v3728_v55, %v4407_v2  ;;  %v2432_v52 = vrot.slane %v3784_v20, %v4404_v59  ;;  %v4412_v22 = vld [vmem:[#allocation25_spill] sm:$0xff]  ;;  %v4414_v43 = vld [vmem:[#allocation27_spill] sm:$0xff] }
 0x17d   :  { %v2439_v46 = vrot.slane %v3784_v20, %v4405_v61  ;;  %v1657_v48 = vcombine.low %v1649_v30, %v1656_v44  ;;  %v1360_v45 = vrot.slane %v3728_v55, %v4408_v14  ;;  %v1364_v41 = vrot.slane %v3728_v55, %v4409_v19  ;;  %v4413_v30 = vld [vmem:[#allocation26_spill] sm:$0xff]  ;;  %v4415_v44 = vld [vmem:[#allocation28_spill] sm:$0xff] }
 0x17e   :  { %2811 = vmatprep.mubr.msk.f32.mxu0 %vm143_vm1, %v416_v11  ;;  %v424_v16 = vrot.slane %v417_v9, %v4401_v57  ;;  %v1368_v1 = vrot.slane %v3728_v55, %v4410_v21  ;;  %v1372_v49 = vrot.slane %v3728_v55, %v3305_v60  ;;  %v2460_v3 = vmul.f32 %v2418_v51, %v4411_v0  ;;  %v4417_v14 = vld [vmem:[#allocation30_spill] sm:$0xff] }
 0x17f   :  { %v2461_v18 = vmul.f32 %v2425_v8, %v4412_v22  ;;  %2825 = vmatmul.mubr.msk.f32.vlgmr.msra.gmra.mrb[0].mxu1 %vm1010_vm0, %v1657_v48  ;;  %v1407_v32 = vmul.f32 %v1344_v26, %v4413_v30  ;;  %v1408_v11 = vmul.f32 %v1348_v35, %v4414_v43  ;;  %v1409_v9 = vmul.f32 %v1352_v63, %v4415_v44  ;;  %v4419_v8 = vld [vmem:[#allocation31_spill] sm:$0xff]  ;;  %v4420_v35 = vld [vmem:[#allocation32_spill] sm:$0xff] }
 0x180   :  { %2880 = vmatpush3.bf16.msra.mxu1 %v2869_v58  ;;  %2812 = vmatmul.mubr.msk.f32.vlgmr.msra.gmra.mrb[0].mxu0 %vm143_vm1, %v424_v16  ;;  %v1410_v2 = vmul.f32 %v1356_v47, %v4416_v37  ;;  %v1411_v19 = vmul.f32 %v1360_v45, %v4417_v14  ;;  %v2446_v60 = vrot.slane %v3790_v39, %v4404_v59  ;;  %v4418_v51 = vmov 0.0   ;;  %v4421_v16 = vld [vmem:[#allocation33_spill] sm:$0xff]  ;;  %v4424_v37 = vld [vmem:[#allocation22_spill] sm:$0xff] }
 0x181   :  { %v2453_v55 = vrot.slane %v3790_v39, %v4405_v61  ;;  %2870 = vmatpush3.bf16.msra.mxu0 %v2869_v58  ;;  %2827 = vmatprep.mubr.msk.f32.mxu1 %vm2950_vm5, %v4418_v51  ;;  %v1412_v26 = vmul.f32 %v1364_v41, %v4419_v8  ;;  %v1413_v48 = vmul.f32 %v1368_v1, %v4420_v35  ;;  %v4422_v21 = vmov 0.0|0.0  }
 0x182   :  { %v1414_v63 = vmul.f32 %v1372_v49, %v4421_v16  ;;  %v1488_v47 = vmul.f32 %v3591_v36, %v1407_v32  ;;  %v1489_v45 = vmul.f32 %v3597_v62, %v1408_v11  ;;  %2878 = vmatprep.subr.bf16.mxu1 %v4422_v21  ;;  %v1490_v0 = vmul.f32 %v3628_v33, %v1409_v9 }
 0x183   :  { %v1491_v39 = vmul.f32 %v3636_v54, %v1410_v2  ;;  %v1492_v58 = vmul.f32 %v3594_v13, %v1411_v19  ;;  %v1493_v22 = vmul.f32 %v3600_v10, %v1412_v26  ;;  %2871 = vmatprep.subr.bf16.mxu0 %v4422_v21  ;;  %v1494_v41 = vmul.f32 %v3632_v25, %v1413_v48  ;;  %v4425_v2 = vld [vmem:[#allocation23_spill] sm:$0xff]  ;;  %v4426_v19 = vld [vmem:[#allocation4_spill] sm:$0xff] }
 0x184   :  { %v1495_v1 = vmul.f32 %v3640_v34, %v1414_v63  ;;  %v1569_v49 = vadd.f32 %v3603_v53, %v1488_v47  ;;  %v1570_v30 = vadd.f32 %v3612_v29, %v1489_v45  ;;  %2881 = vmatpush3.bf16.msra.mxu1 %v3770_v6  ;;  %v1571_v33 = vadd.f32 %v3644_v40, %v1490_v0  ;;  %v2762_v0 = vld [vmem:[%s4270_s11] ss:$0 sm:$0xff] }
 0x185   :  { %v1572_v54 = vadd.f32 %v3656_v50, %v1491_v39  ;;  %v1573_v13 = vadd.f32 %v3609_v4, %v1492_v58  ;;  %v1574_v10 = vadd.f32 %v3621_v12, %v1493_v22  ;;  %2873 = vmatpush3.bf16.msra.mxu0 %v3770_v6  ;;  %v1575_v25 = vadd.f32 %v3652_v24, %v1494_v41  ;;  %v4423_v4 = vld [vmem:[#allocation3_spill] sm:$0xff] }
 0x186   :  { %v1576_v34 = vadd.f32 %v3666_v7, %v1495_v1  ;;  %v1658_v32 = vcombine.low %v1569_v49, %v1570_v30  ;;  %v1496_v43 = vmul.f32 %v3591_v36, %v3778_v31  ;;  %2879 = vmatprep.subr.bf16.mxu1 %v4422_v21  ;;  %v1497_v50 = vmul.f32 %v3597_v62, %v3781_v5 }
 0x187   :  { %v1659_v11 = vcombine.low %v1571_v33, %v1572_v54  ;;  %v1660_v40 = vcombine.low %v1573_v13, %v1574_v10  ;;  %2874 = vmatprep.subr.bf16.mxu0 %v4422_v21  ;;  %2845 = vmatprep.mubr.msk.f32.mxu0 %vm2950_vm5, %v4418_v51  ;;  %v2464_v12 = vmul.f32 %v2446_v60, %v4423_v4  ;;  %v2774_v33 = vld [vmem:[%s4272_s17] ss:$0 sm:$0xff] }
 0x188   :  { %v1661_v24 = vcombine.low %v1575_v25, %v1576_v34  ;;  %v1668_v7 = vrot.slane %v1658_v32, %v3091_v15  ;;  %v1577_v6 = vadd.f32 %v3603_v53, %v1496_v43  ;;  %2882 = vmatpush3.bf16.msra.mxu1 %v3772_v56  ;;  %v1578_v62 = vadd.f32 %v3612_v29, %v1497_v50 }
 0x189   :  { %v1675_v31 = vrot.slane %v1659_v11, %v3091_v15  ;;  %v1682_v36 = vrot.slane %v1660_v40, %v3091_v15  ;;  %2876 = vmatpush3.bf16.msra.mxu0 %v3772_v56  ;;  %v2475_v5 = vmul.f32 %v3699_v17, %v2460_v3  ;;  %v2476_v9 = vmul.f32 %v3712_v42, %v2461_v18 }
 0x18a   :  { %v1689_v44 = vrot.slane %v1661_v24, %v3091_v15  ;;  %v2462_v53 = vmul.f32 %v2432_v52, %v4424_v37  ;;  %v2463_v14 = vmul.f32 %v2439_v46, %v4425_v2  ;;  %v2465_v29 = vmul.f32 %v2453_v55, %v4426_v19  ;;  %739 = vst.msk [vmem:[%s4273_s22 + $0x8] sm:$0x1f] %vm738_vm8, %v4418_v51 }
 0x18b   :  { %v1690_v60 = vcombine.low %v1668_v7, %v1675_v31  ;;  %v1707_v56 = vcombine.low %v1577_v6, %v1578_v62  ;;  %v2490_v3 = vadd.f32 %v3722_v38, %v2475_v5  ;;  %v2491_v26 = vadd.f32 %v3766_v23, %v2476_v9  ;;  %741 = vst.msk [vmem:[%s4273_s22 + $0x18] sm:$0x1f] %vm738_vm8, %v4418_v51 }
 0x18c   :  { %v1691_v8 = vcombine.low %v1682_v36, %v1689_v44  ;;  %v2477_v18 = vmul.f32 %v3699_v17, %v2462_v53  ;;  %v2478_v35 = vmul.f32 %v3712_v42, %v2463_v14  ;;  %v2479_v46 = vmul.f32 %v3699_v17, %v2464_v12 }
 0x18d   :  { %v1698_v59 = vrot.slane %v1690_v60, %v3091_v15  ;;  %v2515_v48 = vcombine.low %v2490_v3, %v2491_v26  ;;  %v2480_v55 = vmul.f32 %v3712_v42, %v2465_v29  ;;  %v1714_v63 = vrot.slane %v1707_v56, %v3091_v15 }
 0x18e   :  { %v1705_v52 = vrot.slane %v1691_v8, %v3091_v15  ;;  %v2492_v20 = vadd.f32 %v3722_v38, %v2477_v18  ;;  %v2493_v61 = vadd.f32 %v3766_v23, %v2478_v35  ;;  %v2494_v45 = vadd.f32 %v3722_v38, %v2479_v46  ;;  %v2749_v38 = vld [vmem:[%s4271_s5] ss:$0 sm:$0xff] }
 0x18f   :  { %2846 = vmatmul.mubr.msk.f32.vlgmr.msra.gmra.mrb[2].mxu0 %vm2302_vm4, %v2515_v48  ;;  %v2495_v17 = vadd.f32 %v3766_v23, %v2480_v55  ;;  %v1721_v42 = vrot.slane %v1714_v63, %v3091_v15 }
 0x190   :  { %v1706_v16 = vcombine.low %v1698_v59, %v1705_v52  ;;  %2848 = vmatprep.mubr.msk.f32.mxu0 %vm2950_vm5, %v4418_v51  ;;  %v2516_v47 = vcombine.low %v2492_v20, %v2493_v61 }
 0x191   :  { %v2517_v21 = vcombine.low %v2494_v45, %v2495_v17 }
 0x192   :  { %2828 = vmatmul.mubr.msk.f32.gmra.mrb[2].mxu1 %vm1010_vm0, %v1706_v16 }
 0x193   :  { %2830 = vmatprep.mubr.msk.f32.mxu1 %vm2950_vm5, %v4418_v51  ;;  %2849 = vmatmul.mubr.msk.f32.gmra.mrb[4].mxu0 %vm2302_vm4, %v2516_v47 }
 0x196   :  { %2831 = vmatmul.mubr.msk.f32.gmra.mrb[4].mxu1 %vm1010_vm0, %v1721_v42 }
 0x197   :  { %2851 = vmatprep.mubr.msk.f32.mxu1 %vm2950_vm5, %v4418_v51 }
 0x19a   :  { %2852 = vmatmul.mubr.msk.f32.vlgmr.msra.gmra.mrb[6].mxu1 %vm2302_vm4, %v2517_v21 }
 0x252   :  { %v1794_v39 = vpop.f32.mrb[0].mxu1 }
 0x253   :  { %v1795_v23 = vadd.f32 %v2762_v0, %v1794_v39  ;;  %v2826_v58 = vpop.f32.mrb[1].mxu1  ;;  %v2813_v22 = vpop.f32.mrb[0].mxu0 }
 0x254   :  { %v495_v41 = vpop.f32.mrb[1].mxu0  ;;  %v501_v7 = vadd.f32 %v2813_v22, %v2749_v38 }
 0x255   :  { %v496_v1 = vadd.f32 %v2749_v38, %v495_v41  ;;  %v1808_v49 = vsel %vm143_vm1, %v1795_v23, 0.0 }
 0x256   :  { %1809 = vadd.xlane.f32.xlu1 %v1808_v49  ;;  %v507_v44 = vsel %vm147_vm2, %v501_v7, 0.0 }
 0x257   :  { %v504_v30 = vsel %vm143_vm1, %v496_v1, 0.0 }
 0x25a   :  { %505 = vadd.xlane.f32.xlu1 %v504_v30  ;;  %v2938_v30 = vld [vmem:[%s4342_s1 + $0x8] sm:$0x3f] }
 0x262   :  { %v2590_v54 = vpop.f32.mrb[2].mxu0 }
 0x263   :  { %v2591_v13 = vadd.f32 %v2774_v33, %v2590_v54  ;;  %v2847_v10 = vpop.f32.mrb[3].mxu0 }
 0x265   :  { %v1799_v25 = vpop.f32.mrb[2].mxu1  ;;  %v2604_v43 = vsel %vm143_vm1, %v2591_v13, 0.0 }
 0x266   :  { %v1800_v34 = vadd.f32 %v2762_v0, %v1799_v25  ;;  %v2829_v32 = vpop.f32.mrb[3].mxu1  ;;  %2605 = vadd.xlane.f32.xlu1 %v2604_v43  ;;  %v2595_v11 = vpop.f32.mrb[4].mxu0 }
 0x267   :  { %v2850_v50 = vpop.f32.mrb[5].mxu0  ;;  %v2596_v5 = vadd.f32 %v2774_v33, %v2595_v11 }
 0x268   :  { %v1811_v40 = vsel %vm143_vm1, %v1800_v34, 0.0 }
 0x269   :  { %1812 = vadd.xlane.f32.xlu0 %v1811_v40  ;;  %v1804_v4 = vpop.f32.mrb[4].mxu1  ;;  %v2607_v37 = vsel %vm143_vm1, %v2596_v5, 0.0 }
 0x26a   :  { %v1805_v12 = vadd.f32 %v2762_v0, %v1804_v4  ;;  %v2832_v24 = vpop.f32.mrb[5].mxu1 }
 0x26c   :  { %v1815_v6 = vsel %vm1814_vm6, %v1805_v12, 0.0 }
 0x26d   :  { %1816 = vadd.xlane.f32.xlu0 %v1815_v6  ;;  %v2600_v31 = vpop.f32.mrb[6].mxu1 }
 0x26e   :  { %v2601_v36 = vadd.f32 %v2774_v33, %v2600_v31  ;;  %v2853_v62 = vpop.f32.mrb[7].mxu1  ;;  %v582_v33 = vand.u32 2147483647, %v2938_v30 }
 0x270   :  { %v2610_v9 = vsel %vm143_vm1, %v2601_v36, 0.0  ;;  %v587_v43 = vsel %vm583_vm7, %v582_v33, 0.0 }
 0x271   :  { %508 = vadd.xlane.f32.xlu0 %v507_v44  ;;  %2611 = vadd.xlane.f32.xlu1 %v2610_v9 }
 0x275   :  { %2608 = vadd.xlane.f32.xlu0 %v2607_v37 }
 0x2e3   :  { %v1810_v53 = vpop.xlane.xlu1 %1809 }
 0x2e4   :  { %v1818_v2 = vmul.f32 0.03125, %v1810_v53 }
 0x2e6   :  { %v3924_v14 = vsub.f32 %v1795_v23, %v1818_v2 }
 0x2e7   :  { %v506_v19 = vpop.xlane.xlu1 %505 }
 0x2e8   :  { %v510_v29 = vmul.f32 0.03125, %v506_v19  ;;  %v1824_v60 = vmul.f32 %v3924_v14, %v3924_v14 }
 0x2ea   :  { %v3928_v56 = vsub.f32 %v496_v1, %v510_v29  ;;  %v1827_v3 = vsel %vm143_vm1, %v1824_v60, 0.0 }
 0x2eb   :  { %1828 = vadd.xlane.f32.xlu1 %v1827_v3 }
 0x2ec   :  { %v514_v8 = vmul.f32 %v3928_v56, %v3928_v56 }
 0x2ee   :  { %v516_v26 = vsel %vm143_vm1, %v514_v8, 0.0 }
 0x2ef   :  { %517 = vadd.xlane.f32.xlu1 %v516_v26 }
 0x2f3   :  { %v2606_v18 = vpop.xlane.xlu1 %2605 }
 0x2f4   :  { %v2613_v35 = vmul.f32 0.03125, %v2606_v18 }
 0x2f6   :  { %v1813_v59 = vpop.xlane.xlu0 %1812  ;;  %v3934_v48 = vsub.f32 %v2591_v13, %v2613_v35  ;;  %v4005_v35 = vld [vmem:[%s4277_s3] sm:$0xff] }
 0x2f7   :  { %v1819_v52 = vmul.f32 0.03125, %v1813_v59 }
 0x2f8   :  { %v2619_v61 = vmul.f32 %v3934_v48, %v3934_v48 }
 0x2f9   :  { %v3936_v20 = vsub.f32 %v1800_v34, %v1819_v52  ;;  %v2939_v34 = vld [vmem:[%s4342_s1] sm:$0x3f] }
 0x2fa   :  { %v1817_v46 = vpop.xlane.xlu0 %1816  ;;  %v2622_v63 = vsel %vm143_vm1, %v2619_v61, 0.0  ;;  %v581_v32 = vand.u32 2147483647, %v2939_v34 }
 0x2fb   :  { %v1820_v55 = vmul.f32 0.03125, %v1817_v46  ;;  %v1825_v16 = vmul.f32 %v3936_v20, %v3936_v20  ;;  %2623 = vadd.xlane.f32.xlu1 %v2622_v63 }
 0x2fc   :  { %v584_v40 = vsel %vm583_vm7, %v581_v32, 0.0 }
 0x2fd   :  { %v3943_v47 = vsub.f32 %v1805_v12, %v1820_v55  ;;  %v1830_v45 = vsel %vm143_vm1, %v1825_v16, 0.0  ;;  %v4018_v16 = vld [vmem:[%s4277_s3 + $0x10] sm:$0xff] }
 0x2fe   :  { %v509_v17 = vpop.xlane.xlu0 %508  ;;  %1831 = vadd.xlane.f32.xlu0 %v1830_v45  ;;  %v2612_v42 = vpop.xlane.xlu1 %2611  ;;  %v2678_v45 = vcombine.high %v4005_v35, %v4005_v35 }
 0x2ff   :  { %v511_v21 = vmul.f32 0.03125, %v509_v17  ;;  %v1826_v0 = vmul.f32 %v3943_v47, %v3943_v47  ;;  %v2615_v39 = vmul.f32 0.03125, %v2612_v42 }
 0x301   :  { %v3948_v38 = vsub.f32 %v501_v7, %v511_v21  ;;  %v1833_v23 = vsel %vm1814_vm6, %v1826_v0, 0.0  ;;  %v3951_v58 = vsub.f32 %v2601_v36, %v2615_v39  ;;  %v3985_v36 = vld [vmem:[%s4274_s14] ss:$0 sm:$0xff] }
 0x302   :  { %1834 = vadd.xlane.f32.xlu0 %v1833_v23  ;;  %v2609_v22 = vpop.xlane.xlu0 %2608 }
 0x303   :  { %v2614_v41 = vmul.f32 0.03125, %v2609_v22  ;;  %v515_v1 = vmul.f32 %v3948_v38, %v3948_v38  ;;  %v2621_v49 = vmul.f32 %v3951_v58, %v3951_v58 }
 0x305   :  { %v3960_v54 = vsub.f32 %v2596_v5, %v2614_v41  ;;  %v519_v13 = vsel %vm147_vm2, %v515_v1, 0.0  ;;  %v2628_v10 = vsel %vm143_vm1, %v2621_v49, 0.0  ;;  %v3991_v5 = vld [vmem:[%s4275_s15] ss:$0 sm:$0xff]  ;;  %v2679_v1 = vcombine.high %v4018_v16, %v4018_v16 }
 0x306   :  { %520 = vadd.xlane.f32.xlu0 %v519_v13  ;;  %2629 = vadd.xlane.f32.xlu1 %v2628_v10 }
 0x307   :  { %v2620_v25 = vmul.f32 %v3960_v54, %v3960_v54 }
 0x309   :  { %v2625_v11 = vsel %vm143_vm1, %v2620_v25, 0.0 }
 0x30a   :  { %2626 = vadd.xlane.f32.xlu0 %v2625_v11  ;;  %588 = vadd.xlane.f32.xlu1 %v587_v43 }
 0x30e   :  { %585 = vadd.xlane.f32.xlu0 %v584_v40 }
 0x378   :  { %v1829_v50 = vpop.xlane.xlu1 %1828 }
 0x379   :  { %v1836_v4 = vmul.f32 0.03125, %v1829_v50 }
 0x37b   :  { %v1839_v12 = vadd.f32 1e-05, %v1836_v4 }
 0x37c   :  { %v518_v24 = vpop.xlane.xlu1 %517 }
 0x37d   :  { %2918 = vrsqrt.f32 %v1839_v12  ;;  %v522_v7 = vmul.f32 0.03125, %v518_v24 }
 0x37f   :  { %v524_v6 = vadd.f32 1e-05, %v522_v7 }
 0x381   :  { %2920 = vrsqrt.f32 %v524_v6 }
 0x387   :  { %v2919_v31 = vpop.eup %2918 }
 0x388   :  { %v1845_v62 = vmul.f32 %v2919_v31, %v3924_v14  ;;  %v2624_v44 = vpop.xlane.xlu1 %2623  ;;  %v3999_v14 = vld [vmem:[%s4276_s8] ss:$0 sm:$0xff] }
 0x389   :  { %v2631_v37 = vmul.f32 0.03125, %v2624_v44 }
 0x38a   :  { %v1855_v9 = vmul.f32 %v3985_v36, %v1845_v62 }
 0x38b   :  { %v2921_v53 = vpop.eup %2920  ;;  %v1832_v2 = vpop.xlane.xlu0 %1831  ;;  %v2634_v3 = vadd.f32 1e-05, %v2631_v37 }
 0x38c   :  { %v1865_v19 = vadd.f32 %v3991_v5, %v1855_v9  ;;  %v1837_v29 = vmul.f32 0.03125, %v1832_v2  ;;  %v528_v60 = vmul.f32 %v2921_v53, %v3928_v56  ;;  %v4010_v56 = vld [vmem:[%s4278_s9] ss:$0 sm:$0xff] }
 0x38d   :  { %2922 = vrsqrt.f32 %v2634_v3 }
 0x38e   :  { %v1871_v8 = vcombine.high %v1865_v19, %v1865_v19  ;;  %v1878_v26 = vrot.slane %v1865_v19, %v3091_v15  ;;  %v1840_v18 = vadd.f32 1e-05, %v1837_v29  ;;  %v537_v52 = vmul.f32 %v3999_v14, %v528_v60  ;;  %v4052_v60 = vld [vmem:[%s4279_s20] ss:$0 sm:$0xff] }
 0x38f   :  { %v1835_v59 = vpop.xlane.xlu0 %1834 }
 0x390   :  { %v1885_v61 = vrot.slane %v1871_v8, %v3091_v15  ;;  %v1886_v46 = vcombine.high %v1878_v26, %v1878_v26  ;;  %v1894_v55 = vrot.slane %v1878_v26, %v3091_v15  ;;  %2924 = vrsqrt.f32 %v1840_v18 }
 0x391   :  { %v1838_v63 = vmul.f32 0.03125, %v1835_v59  ;;  %v4023_v17 = vadd.f32 %v4010_v56, %v537_v52 }
 0x392   :  { %v1887_v42 = vcombine.high %v1885_v61, %v1885_v61  ;;  %v1901_v21 = vrot.slane %v1885_v61, %v3091_v15  ;;  %v1908_v0 = vrot.slane %v1886_v46, %v3091_v15  ;;  %v1916_v39 = vcombine.high %v1894_v55, %v1894_v55 }
 0x393   :  { %v2143_v23 = vcombine.low %v1894_v55, %v1894_v55  ;;  %v1841_v22 = vadd.f32 1e-05, %v1838_v63  ;;  %v521_v41 = vpop.xlane.xlu0 %520  ;;  %v550_v49 = vcombine.high %v4023_v17, %v4023_v17  ;;  %v4036_v32 = vrot.slane %v4023_v17, %v4401_v57  ;;  %v2630_v31 = vpop.xlane.xlu1 %2629  ;;  %v4062_v17 = vld [vmem:[%s4280_s21] ss:$0 sm:$0xff] }
 0x394   :  { %v4032_v30 = vrot.slane %v1887_v42, %v3091_v15  ;;  %v1917_v33 = vcombine.high %v1901_v21, %v1901_v21  ;;  %v1918_v13 = vcombine.high %v1908_v0, %v1908_v0  ;;  %v1991_v10 = vcombine.low %v1894_v55, %v1908_v0 }
 0x395   :  { %v2768_v25 = vcombine.high %v1894_v55, %v1908_v0  ;;  %v2144_v34 = vcombine.low %v1908_v0, %v1916_v39  ;;  %2926 = vrsqrt.f32 %v1841_v22  ;;  %v2153_v24 = vrot.slane %v2143_v23, %v3091_v15 }
 0x396   :  { %v1993_v43 = vcombine.low %v1901_v21, %v4032_v30  ;;  %v2769_v11 = vcombine.high %v1901_v21, %v4032_v30  ;;  %v2001_v40 = vrot.slane %v1991_v10, %v3091_v15  ;;  %v2145_v50 = vcombine.low %v1918_v13, %v1901_v21 }
 0x397   :  { %v2008_v4 = vrot.slane %v2768_v25, %v3091_v15  ;;  %v2146_v12 = vcombine.low %v4032_v30, %v1917_v33  ;;  %v2160_v7 = vrot.slane %v2144_v34, %v3091_v15  ;;  %v2627_v6 = vpop.xlane.xlu0 %2626  ;;  %v2923_v62 = vpop.eup %2922  ;;  %v523_v53 = vmul.f32 0.03125, %v521_v41 }
 0x398   :  { %v2015_v44 = vrot.slane %v1993_v43, %v3091_v15  ;;  %v2022_v9 = vrot.slane %v2769_v11, %v3091_v15  ;;  %v2167_v37 = vrot.slane %v2145_v50, %v3091_v15  ;;  %v2640_v3 = vmul.f32 %v2923_v62, %v3934_v48 }
 0x399   :  { %v2023_v2 = vcombine.low %v2001_v40, %v2008_v4  ;;  %v2174_v19 = vrot.slane %v2146_v12, %v3091_v15  ;;  %v2175_v29 = vcombine.low %v2153_v24, %v2160_v7  ;;  %v525_v18 = vadd.f32 1e-05, %v523_v53 }
 0x39a   :  { %v2925_v8 = vpop.eup %2924  ;;  %v2024_v26 = vcombine.low %v2015_v44, %v2022_v9  ;;  %v2632_v59 = vmul.f32 0.03125, %v2627_v6  ;;  %v2633_v52 = vmul.f32 0.03125, %v2630_v31  ;;  %v1919_v63 = vcombine.high %v4032_v30, %v4032_v30 }
 0x39b   :  { %v2031_v61 = vrot.slane %v2023_v2, %v3091_v15  ;;  %v2176_v46 = vcombine.low %v2167_v37, %v2174_v19  ;;  %v1846_v55 = vmul.f32 %v2925_v8, %v3936_v20  ;;  %v2183_v48 = vrot.slane %v2175_v29, %v3091_v15  ;;  %v586_v39 = vpop.xlane.xlu0 %585 }
 0x39c   :  { %v2038_v42 = vrot.slane %v2024_v26, %v3091_v15  ;;  %v2650_v21 = vmul.f32 %v4052_v60, %v2640_v3  ;;  %v2635_v0 = vadd.f32 1e-05, %v2632_v59  ;;  %2928 = vrsqrt.f32 %v525_v18 }
 0x39d   :  { %v2190_v23 = vrot.slane %v2176_v46, %v3091_v15  ;;  %v1856_v20 = vmul.f32 %v3985_v36, %v1846_v55  ;;  %v2636_v22 = vadd.f32 1e-05, %v2633_v52  ;;  %v4071_v33 = vrot.slane %v550_v49, %v4401_v57 }
 0x39e   :  { %v2039_v41 = vcombine.low %v2031_v61, %v2038_v42  ;;  %v2660_v30 = vadd.f32 %v4062_v17, %v2650_v21  ;;  %2930 = vrsqrt.f32 %v2635_v0  ;;  %v565_v34 = vcombine.high %v4036_v32, %v4036_v32 }
 0x39f   :  { %v2927_v13 = vpop.eup %2926  ;;  %v4073_v10 = vcombine.low %v2183_v48, %v2190_v23  ;;  %v1866_v25 = vadd.f32 %v3991_v5, %v1856_v20  ;;  %vm590_vm9 = vcmp.ne.f32.partialorder %v586_v39, 0.0  ;;  %2932 = vrsqrt.f32 %v2636_v22 }
 0x3a0   :  { %v1847_v43 = vmul.f32 %v2927_v13, %v3943_v47  ;;  %v2121_v11 = vsel %vm143_vm1, %v2039_v41, 0.0  ;;  %v2666_v40 = vcombine.high %v2660_v30, %v2660_v30  ;;  %v2682_v49 = vadd.f32 %v4005_v35, %v2660_v30  ;;  %v4427_v35 = vld [vmem:[#allocation7_spill] sm:$0xff] }
 0x3a1   :  { %v1920_v50 = vcombine.high %v1866_v25, %v1866_v25  ;;  %v1927_v4 = vrot.slane %v1866_v25, %v3091_v15  ;;  %v4083_v12 = vsel %vm590_vm9, 1.0, %v4418_v51  ;;  %v566_v9 = vcombine.high %v4071_v33, %v4071_v33 }
 0x3a2   :  { %v1857_v24 = vmul.f32 %v3985_v36, %v1847_v43  ;;  %v2683_v7 = vadd.f32 %v2678_v45, %v2666_v40  ;;  %v604_v47 = vrot.slane %v4083_v12, %v3268_v27  ;;  %v611_v6 = vrot.slane %v4083_v12, %v3271_v28 }
 0x3a3   :  { %v1934_v31 = vrot.slane %v1920_v50, %v3091_v15  ;;  %v1935_v62 = vcombine.high %v1927_v4, %v1927_v4  ;;  %v1943_v44 = vrot.slane %v1927_v4, %v3091_v15  ;;  %v618_v45 = vrot.slane %v4083_v12, %v4427_v35 }
 0x3a4   :  { %v1867_v36 = vadd.f32 %v3991_v5, %v1857_v24  ;;  %v4098_v37 = vcombine.low %v2682_v49, %v2683_v7  ;;  %v4103_v53 = vmul.f32 %v604_v47, %v4036_v32  ;;  %v4109_v5 = vmul.f32 %v611_v6, %v565_v34 }
 0x3a5   :  { %v1936_v2 = vcombine.high %v1934_v31, %v1934_v31  ;;  %v1950_v19 = vrot.slane %v1934_v31, %v3091_v15  ;;  %v1957_v29 = vrot.slane %v1935_v62, %v3091_v15  ;;  %v1965_v3 = vcombine.high %v1943_v44, %v1943_v44 }
 0x3a6   :  { %v2046_v8 = vrot.slane %v1943_v44, %v3091_v15  ;;  %v2192_v26 = vcombine.low %v1919_v63, %v1943_v44  ;;  %v1975_v18 = vrot.slane %v1867_v36, %v3091_v15  ;;  %v2929_v59 = vpop.eup %2928  ;;  %v2719_v0 = vrot.slane %v4098_v37, 7 }
 0x3a7   :  { %v1964_v52 = vrot.slane %v1936_v2, %v3091_v15  ;;  %v1966_v61 = vcombine.high %v1950_v19, %v1950_v19  ;;  %v1967_v46 = vcombine.high %v1957_v29, %v1957_v29  ;;  %v2054_v32 = vcombine.low %v1957_v29, %v1965_v3 }
 0x3a8   :  { %v2931_v55 = vpop.eup %2930  ;;  %v2053_v48 = vrot.slane %v2046_v8, %v3091_v15  ;;  %v2207_v42 = vcombine.low %v1957_v29, %v1957_v29  ;;  %v2770_v21 = vcombine.high %v1943_v44, %v1957_v29  ;;  %v2199_v63 = vrot.slane %v2192_v26, %v3091_v15 }
 0x3a9   :  { %v2055_v39 = vcombine.low %v1967_v46, %v1950_v19  ;;  %v2209_v23 = vcombine.low %v1950_v19, %v1964_v52  ;;  %v2771_v20 = vcombine.high %v1950_v19, %v1964_v52  ;;  %v2933_v22 = vpop.eup %2932  ;;  %v1968_v13 = vcombine.high %v1964_v52, %v1964_v52 }
 0x3aa   :  { %v2217_v41 = vrot.slane %v2207_v42, %v3091_v15  ;;  %v2224_v30 = vrot.slane %v2770_v21, %v3091_v15  ;;  %v2056_v25 = vcombine.low %v1964_v52, %v1966_v61  ;;  %v2064_v34 = vrot.slane %v2054_v32, %v3091_v15 }
 0x3ab   :  { %v2071_v43 = vrot.slane %v2055_v39, %v3091_v15  ;;  %v2231_v40 = vrot.slane %v2209_v23, %v3091_v15  ;;  %v2238_v50 = vrot.slane %v2771_v20, %v3091_v15  ;;  %v2123_v49 = vsel %vm2122_vm10, %v2053_v48, 0.0 }
 0x3ac   :  { %v2239_v4 = vcombine.low %v2217_v41, %v2224_v30  ;;  %v1976_v24 = vcombine.high %v1975_v18, %v1975_v18  ;;  %v1983_v7 = vrot.slane %v1975_v18, %v3091_v15  ;;  %v2124_v31 = vadd.f32 %v2123_v49, %v2121_v11 }
 0x3ad   :  { %v2240_v47 = vcombine.low %v2231_v40, %v2238_v50  ;;  %v2086_v6 = vcombine.low %v2064_v34, %v2071_v43  ;;  %v2206_v62 = vrot.slane %v2199_v63, %v3091_v15  ;;  %v2078_v36 = vrot.slane %v2056_v25, %v3091_v15  ;;  %v2675_v50 = vld [vmem:[%s4277_s3 + $0x18] sm:$0xf] }
 0x3ae   :  { %v4125_v44 = vrot.slane %v2239_v4, %v3091_v15  ;;  %v1990_v2 = vrot.slane %v1976_v24, %v3091_v15  ;;  %v2057_v19 = vcombine.low %v1968_v13, %v1983_v7  ;;  %v2125_v3 = vrot.slane %v2124_v31, 4 }
 0x3af   :  { %v4130_v29 = vrot.slane %v2240_v47, %v3091_v15  ;;  %v2278_v8 = vsel %vm2277_vm11, %v2206_v62, 0.0  ;;  %v4134_v26 = vmul.f32 %v2929_v59, %v3948_v38  ;;  %v2641_v61 = vmul.f32 %v2931_v55, %v3960_v54  ;;  %v2673_v54 = vld [vmem:[%s4277_s3 + $0x8] sm:$0xf] }
 0x3b0   :  { %v2085_v11 = vrot.slane %v2057_v19, %v3091_v15  ;;  %v2109_v18 = vrot.slane %v1990_v2, %v3091_v15  ;;  %v2256_v52 = vcombine.low %v1983_v7, %v1990_v2  ;;  %2281 = vst.msk [vmem:[%s4281_s23 + $0x8] sm:$0x1f] %vm738_vm8, %v2278_v8  ;;  %v2094_v46 = vrot.slane %v2086_v6, %v3091_v15 }
 0x3b1   :  { %v2126_v32 = vadd.f32 %v2125_v3, %v2124_v31  ;;  %v2698_v38 = vsel %vm143_vm1, %v4098_v37, 0.0  ;;  %v2642_v59 = vmul.f32 %v2933_v22, %v3951_v58  ;;  %v2651_v39 = vmul.f32 %v4052_v60, %v2641_v61 }
 0x3b2   :  { %v2087_v48 = vcombine.low %v2078_v36, %v2085_v11  ;;  %v2116_v42 = vrot.slane %v2109_v18, %v3091_v15  ;;  %v2263_v21 = vrot.slane %v2256_v52, %v3091_v15  ;;  %v648_v23 = vmul.f32 %v618_v45, %v4071_v33 }
 0x3b3   :  { %v2127_v63 = vrot.slane %v2126_v32, 2  ;;  %v2652_v55 = vmul.f32 %v4052_v60, %v2642_v59  ;;  %v653_v58 = vsel %vm652_vm12, %v4083_v12, 0.0  ;;  %v2661_v30 = vadd.f32 %v4062_v17, %v2651_v39 }
 0x3b4   :  { %v2101_v20 = vrot.slane %v2087_v48, %v3091_v15  ;;  %v2132_v22 = vsel %vm2122_vm10, %v2116_v42, 0.0  ;;  %v2270_v41 = vrot.slane %v2263_v21, %v3091_v15  ;;  %v654_v60 = vrot.slane %v653_v58, 4 }
 0x3b5   :  { %v2128_v13 = vadd.f32 %v2127_v63, %v2126_v32  ;;  %v2662_v25 = vadd.f32 %v4062_v17, %v2652_v55  ;;  %v673_v34 = vcombine.low %v4103_v53, %v4109_v5  ;;  %v2667_v40 = vcombine.high %v2661_v30, %v2661_v30  ;;  %v589_v32 = vpop.xlane.xlu1 %588 }
 0x3b6   :  { %v2102_v43 = vcombine.low %v2094_v46, %v2101_v20  ;;  %v2279_v45 = vsel %vm2277_vm11, %v2270_v41, 0.0  ;;  %v2684_v12 = vadd.f32 %v2673_v54, %v2661_v30  ;;  %v655_v53 = vadd.f32 %v654_v60, %v653_v58 }
 0x3b7   :  { %v2129_v4 = vrot.slane %v2128_v13, 1  ;;  %2283 = vst.msk [vmem:[%s4281_s23 + $0x18] sm:$0x1f] %vm738_vm8, %v2279_v45  ;;  %v2668_v15 = vcombine.high %v2662_v25, %v2662_v25  ;;  %v2686_v17 = vadd.f32 %v2679_v1, %v2662_v25  ;;  %v2685_v49 = vadd.f32 %v4018_v16, %v2667_v40 }
 0x3b8   :  { %v2131_v5 = vsel %vm143_vm1, %v2102_v43, 0.0  ;;  %v2699_v24 = vsel %vm147_vm2, %v2684_v12, 0.0  ;;  %v2720_v7 = vrot.slane %v2684_v12, 7  ;;  %v656_v19 = vrot.slane %v655_v53, 2 }
 0x3b9   :  { %v2130_v47 = vadd.f32 %v2129_v4, %v2128_v13  ;;  %v2133_v6 = vadd.f32 %v2132_v22, %v2131_v5  ;;  %v2700_v31 = vadd.f32 %v2699_v24, %v2698_v38  ;;  %v2687_v62 = vadd.f32 %v2675_v50, %v2668_v15 }
 0x3ba   :  { %v2721_v36 = vsel %vm731_vm13, %v2719_v0, %v2720_v7  ;;  %v4184_v2 = vcombine.low %v2685_v49, %v2686_v17  ;;  %v680_v1 = vrot.slane %v673_v34, %v4401_v57  ;;  %v657_v46 = vadd.f32 %v656_v19, %v655_v53 }
 0x3bb   :  { %v2134_v3 = vrot.slane %v2133_v6, 4  ;;  %v2141_v8 = vmul.f32 0.11111111, %v2130_v47  ;;  %v2701_v11 = vrot.slane %v2700_v31, 4  ;;  %2732 = vst.msk [vmem:[%s4282_s24 + $0x8] sm:$0x1f] %vm738_vm8, %v2721_v36  ;;  %v687_v63 = vrot.slane %v648_v23, %v4401_v57 }
 0x3bc   :  { %v2708_v16 = vsel %vm147_vm2, %v2687_v62, 0.0  ;;  %v2707_v18 = vsel %vm143_vm1, %v4184_v2, 0.0  ;;  %v2722_v52 = vrot.slane %v4184_v2, 7  ;;  %v2723_v61 = vrot.slane %v2687_v62, 7 }
 0x3bd   :  { %v2135_v38 = vadd.f32 %v2134_v3, %v2133_v6  ;;  %v2275_v59 = vsel %vm731_vm13, %v2141_v8, %v4073_v10  ;;  %v2702_v48 = vadd.f32 %v2701_v11, %v2700_v31  ;;  %v2709_v42 = vadd.f32 %v2708_v16, %v2707_v18 }
 0x3be   :  { %2280 = vst.msk [vmem:[%s4281_s23] sm:$0xff] %vm143_vm1, %v2275_v59  ;;  %v2724_v21 = vsel %vm731_vm13, %v2722_v52, %v2723_v61  ;;  %v658_v39 = vrot.slane %v657_v46, 1  ;;  %v538_v54 = vmul.f32 %v3999_v14, %v4134_v26  ;;  %vm591_vm14 = vcmp.ne.f32.partialorder %v589_v32, 0.0 }
 0x3bf   :  { %v2136_v55 = vrot.slane %v2135_v38, 2  ;;  %v2703_v58 = vrot.slane %v2702_v48, 2  ;;  %v2710_v10 = vrot.slane %v2709_v42, 4  ;;  %2734 = vst.msk [vmem:[%s4282_s24 + $0x18] sm:$0x1f] %vm738_vm8, %v2724_v21  ;;  %v2255_v20 = vcombine.low %v4125_v44, %v4130_v29 }
 0x3c0   :  { %v659_v22 = vadd.f32 %v658_v39, %v657_v46  ;;  %v688_v41 = vcombine.low %v680_v1, %v687_v63  ;;  %v547_v30 = vadd.f32 %v4010_v56, %v538_v54  ;;  %v2755_v14 = vsel %vm591_vm14, 1.0, %v4418_v51 }
 0x3c1   :  { %v2137_v23 = vadd.f32 %v2136_v55, %v2135_v38  ;;  %v2704_v13 = vadd.f32 %v2703_v58, %v2702_v48  ;;  %v2711_v25 = vadd.f32 %v2710_v10, %v2709_v42  ;;  %v625_v43 = vrot.slane %v2755_v14, %v3268_v27 }
 0x3c2   :  { %v707_v26 = vsel %vm583_vm7, %v688_v41, 0.0  ;;  %v721_v60 = vadd.f32 1e-06, %v659_v22  ;;  %v573_v34 = vrot.slane %v547_v30, %v4401_v57  ;;  %v632_v56 = vrot.slane %v2755_v14, %v3271_v28 }
 0x3c3   :  { %v2138_v45 = vrot.slane %v2137_v23, 1  ;;  %v2705_v40 = vrot.slane %v2704_v13, 1  ;;  %v2712_v12 = vrot.slane %v2711_v25, 2  ;;  %v708_v44 = vrot.slane %v707_v26, 4 }
 0x3c4   :  { %2934 = vrcp.f32 %v721_v60  ;;  %v574_v29 = vcombine.high %v573_v34, %v573_v34  ;;  %v639_v50 = vrot.slane %v2755_v14, %v4427_v35  ;;  %v649_v53 = vmul.f32 %v625_v43, %v566_v9 }
 0x3c5   :  { %v2139_v4 = vadd.f32 %v2138_v45, %v2137_v23  ;;  %v2706_v15 = vadd.f32 %v2705_v40, %v2704_v13  ;;  %v2713_v51 = vadd.f32 %v2712_v12, %v2711_v25  ;;  %v709_v17 = vadd.f32 %v708_v44, %v707_v26 }
 0x3c6   :  { %v650_v5 = vmul.f32 %v632_v56, %v573_v34  ;;  %v651_v27 = vmul.f32 %v639_v50, %v574_v29  ;;  %v660_v49 = vsel %vm652_vm12, %v2755_v14, 0.0  ;;  %v727_v32 = vrot.slane %v688_v41, 7 }
 0x3c7   :  { %v2142_v24 = vmul.f32 0.11111111, %v2139_v4  ;;  %v2717_v7 = vmul.f32 0.083333336, %v2706_v15  ;;  %v2714_v47 = vrot.slane %v2713_v51, 1  ;;  %v710_v6 = vrot.slane %v709_v17, 2 }
 0x3c8   :  { %v661_v31 = vrot.slane %v660_v49, 4  ;;  %v689_v28 = vcombine.low %v649_v53, %v650_v5  ;;  %v703_v35 = vrot.slane %v651_v27, %v4401_v57 }
 0x3c9   :  { %v2276_v62 = vsel %vm731_vm13, %v2142_v24, %v2255_v20  ;;  %v2729_v36 = vsel %vm731_vm13, %v2717_v7, %v2719_v0  ;;  %v2715_v33 = vadd.f32 %v2714_v47, %v2713_v51  ;;  %v711_v9 = vadd.f32 %v710_v6, %v709_v17 }
 0x3ca   :  { %2282 = vst.msk [vmem:[%s4281_s23 + $0x10] sm:$0xff] %vm143_vm1, %v2276_v62  ;;  %2731 = vst.msk [vmem:[%s4282_s24] sm:$0xff] %vm143_vm1, %v2729_v36  ;;  %v662_v19 = vadd.f32 %v661_v31, %v660_v49  ;;  %v696_v1 = vrot.slane %v689_v28, %v4401_v57 }
 0x3cb   :  { %v2718_v3 = vmul.f32 0.083333336, %v2715_v33  ;;  %v712_v8 = vrot.slane %v711_v9, 1 }
 0x3cc   :  { %v663_v37 = vrot.slane %v662_v19, 2  ;;  %v704_v11 = vcombine.low %v696_v1, %v703_v35 }
 0x3cd   :  { %v2730_v0 = vsel %vm731_vm13, %v2718_v3, %v2722_v52  ;;  %v713_v16 = vadd.f32 %v712_v8, %v711_v9 }
 0x3ce   :  { %v2935_v18 = vpop.eup %2934  ;;  %2733 = vst.msk [vmem:[%s4282_s24 + $0x10] sm:$0xff] %vm143_vm1, %v2730_v0  ;;  %v664_v61 = vadd.f32 %v663_v37, %v662_v19  ;;  %v714_v46 = vsel %vm583_vm7, %v704_v11, 0.0  ;;  %v728_v20 = vrot.slane %v704_v11, 7 }
 0x3cf   :  { %v724_v57 = vmul.f32 %v2935_v18, %v713_v16  ;;  %v715_v38 = vrot.slane %v714_v46, 4 }
 0x3d0   :  { %v665_v59 = vrot.slane %v664_v61, 1 }
 0x3d1   :  { %v732_v48 = vsel %vm731_vm13, %v724_v57, %v727_v32  ;;  %v716_v2 = vadd.f32 %v715_v38, %v714_v46 }
 0x3d2   :  { %v735_v52 = vsel %vm734_vm15, %v732_v48, 0.0  ;;  %v666_v42 = vadd.f32 %v665_v59, %v664_v61 }
 0x3d3   :  { %737 = vst.msk [vmem:[%s4273_s22] sm:$0xff] %vm143_vm1, %v735_v52  ;;  %v717_v21 = vrot.slane %v716_v2, 2 }
 0x3d4   :  { %v722_v39 = vadd.f32 1e-06, %v666_v42 }
 0x3d5   :  { %v718_v63 = vadd.f32 %v717_v21, %v716_v2 }
 0x3d6   :  { %2936 = vrcp.f32 %v722_v39 }
 0x3d7   :  { %v719_v54 = vrot.slane %v718_v63, 1 }
 0x3d9   :  { %v720_v55 = vadd.f32 %v719_v54, %v718_v63 }
 0x3e0   :  { %v2937_v58 = vpop.eup %2936 }
 0x3e1   :  { %v726_v10 = vmul.f32 %v2937_v58, %v720_v55 }
 0x3e3   :  { %v733_v22 = vsel %vm731_vm13, %v726_v10, %v728_v20 }
 0x3e4   :  { %v736_v41 = vsel %vm734_vm15, %v733_v22, 0.0 }
 0x3e5   :  { %740 = vst.msk [vmem:[%s4273_s22 + $0x10] sm:$0xff] %vm143_vm1, %v736_v41 }

</bundles_post_ra>
